<compile_context>
chip_gen: v7x
topology: tpu7x:2x2x1
jax: 0.10.0
libtpu: 0.0.40
codegen_flags: <defaults>
</compile_context>

<pallas_src>
import jax
import jax.numpy as jnp
import numpy as np
from jax.experimental import pallas as pl
from jax.experimental.pallas import tpu as pltpu

_LANE = 128    # lane width / MXU-friendly padding
_TM_MAX = 128  # max batch tile (rows per grid step)


def _round_up(n: int, m: int) -> int:
    return ((n + m - 1) // m) * m


def _pad2(a, rows: int, cols: int):
    return jnp.pad(a, ((0, rows - a.shape[0]), (0, cols - a.shape[1])))


# --------------------------------- kernel ---------------------------------

def _vae_forward_kernel(x_ref, eps_ref,
                        w1_ref, b1_ref, w2_ref, b2_ref,
                        w3_ref, b3_ref, w4_ref, b4_ref,
                        lat_ref, px_ref):
    """Fused VAE forward for one (TM, Dp) batch tile."""
    bf16 = jnp.bfloat16
    f32 = jnp.float32
    x = x_ref[...]                                               # (TM, Dp) bf16

    # ---- encoder: Linear -> ReLU -> fused (mu|log_sigma) head ----
    h1 = jnp.dot(x, w1_ref[...], preferred_element_type=f32) + b1_ref[...]
    h1 = jnp.maximum(h1, 0.0).astype(bf16)                       # (TM, HIDp)
    h2 = jnp.dot(h1, w2_ref[...], preferred_element_type=f32) + b2_ref[...]  # (TM, 2*Lp)
    Lp = h2.shape[-1] // 2
    mu = h2[:, :Lp]
    log_sigma = h2[:, Lp:]

    # ---- reparameterized sample z = mu + exp(log_sigma) * eps (f32 / EUP) ----
    z = mu + jnp.exp(log_sigma) * eps_ref[...]                   # (TM, Lp) f32

    # lane-dense bf16 latent slab: [mu | log_sigma | z] (two 128-aligned stores)
    lat_ref[:, 0:2 * Lp] = h2.astype(lat_ref.dtype)
    lat_ref[:, 2 * Lp:3 * Lp] = z.astype(lat_ref.dtype)

    # ---- decoder / observation model: Linear -> ReLU -> Linear ----
    d1 = jnp.dot(z.astype(bf16), w3_ref[...], preferred_element_type=f32) + b3_ref[...]
    d1 = jnp.maximum(d1, 0.0).astype(bf16)                       # (TM, HIDp)
    px_ref[...] = (jnp.dot(d1, w4_ref[...], preferred_element_type=f32)
                   + b4_ref[...]).astype(px_ref.dtype)


# ---------------------------- one-time weight prep ----------------------------

def prepare_params(params, latent_features: int):
    """Hoisted out of the jitted forward: pad/cast weights to lane-aligned bf16
    blocks once and cache the device arrays."""
    f32, bf16 = jnp.float32, jnp.bfloat16
    w1, b1, w2, b2, w3, b3, w4, b4 = [jnp.asarray(p, f32) for p in params]
    D, HID = w1.shape
    L = latent_features
    Dp, HIDp, Lp = _round_up(D, _LANE), _round_up(HID, _LANE), _round_up(L, _LANE)

    b1 = b1.reshape(1, -1)
    b2 = b2.reshape(1, -1)
    b3 = b3.reshape(1, -1)
    b4 = b4.reshape(1, -1)

    w1p = _pad2(w1, Dp, HIDp).astype(bf16)
    b1p = _pad2(b1, 1, HIDp).astype(f32)
    # encoder head laid out [mu | log_sigma] along the last dim (torch .chunk(2, -1)),
    # each half padded to Lp so both sit on 128-lane boundaries in one fused dot.
    w2p = jnp.concatenate([_pad2(w2[:, :L], HIDp, Lp),
                           _pad2(w2[:, L:], HIDp, Lp)], axis=1).astype(bf16)
    b2p = jnp.concatenate([_pad2(b2[:, :L], 1, Lp),
                           _pad2(b2[:, L:], 1, Lp)], axis=1).astype(f32)
    w3p = _pad2(w3, Lp, HIDp).astype(bf16)
    b3p = _pad2(b3, 1, HIDp).astype(f32)
    # decoder output laid out [px_mu | px_log_sigma], each half padded to Dp.
    w4p = jnp.concatenate([_pad2(w4[:, :D], HIDp, Dp),
                           _pad2(w4[:, D:], HIDp, Dp)], axis=1).astype(bf16)
    b4p = jnp.concatenate([_pad2(b4[:, :D], 1, Dp),
                           _pad2(b4[:, D:], 1, Dp)], axis=1).astype(f32)
    return (w1p, b1p, w2p, b2p, w3p, b3p, w4p, b4p)


# --------------------------------- forward ---------------------------------

def vae_forward(x_nchw, eps, prepared):
    """Runs BaseVAEprob.forward. Returns a dict matching the PyTorch module:
       qz / px as (mu, log_sigma) pairs, pz as zeros (standard-normal prior),
       and the reparameterized sample z."""
    f32, bf16 = jnp.float32, jnp.bfloat16
    w1p, b1p, w2p, b2p, w3p, b3p, w4p, b4p = prepared
    weights = (w1p, b1p, w2p, b2p, w3p, b3p, w4p, b4p)

    B = x_nchw.shape[0]
    x = x_nchw.reshape(B, -1).astype(f32)                  # torch .view(B, -1)
    D = x.shape[1]
    L = eps.shape[1]
    Dp, HIDp = w1p.shape
    Lp = w2p.shape[1] // 2

    # ---- batch tiling: no 128-row padding for tiny batches, aim for >=2 tiles ----
    if B >= 2 * _TM_MAX:
        TM = _TM_MAX
    else:
        TM = min(_TM_MAX, max(16, _round_up(-(-B // 2), 16)))
    Bp = _round_up(B, TM)
    n_tiles = Bp // TM

    xp = _pad2(x, Bp, Dp).astype(bf16)
    epsp = _pad2(eps.astype(f32), Bp, Lp)

    def _tile_spec(cols):
        return pl.BlockSpec((TM, cols), lambda i: (i, 0))

    def _resident(a):
        # whole array, constant block index -> keep resident, single-buffered
        return pl.BlockSpec(a.shape, lambda i: (0,) * a.ndim,
                            pipeline_mode=pl.Buffered(1))

    in_specs = [_tile_spec(Dp), _tile_spec(Lp)] + [_resident(a) for a in weights]
    out_shape = (jax.ShapeDtypeStruct((Bp, 3 * Lp), bf16),
                 jax.ShapeDtypeStruct((Bp, 2 * Dp), bf16))
    out_specs = (_tile_spec(3 * Lp), _tile_spec(2 * Dp))

    # ---- VMEM budget + cost estimate (weights counted once) ----
    def _nbytes(a):
        return int(np.prod(a.shape)) * jnp.dtype(a.dtype).itemsize

    weight_bytes = sum(_nbytes(a) for a in weights)
    stream_in = TM * Dp * 2 + TM * Lp * 4                  # bf16 x tile + f32 eps tile
    stream_out = TM * 3 * Lp * 2 + TM * 2 * Dp * 2         # bf16 output slabs
    vmem_bytes = int(min(weight_bytes + 2 * (stream_in + stream_out) + (4 << 20),
                         40 << 20))
    flops = 2 * Bp * (Dp * HIDp + HIDp * 2 * Lp + Lp * HIDp + HIDp * 2 * Dp)
    cost = pl.CostEstimate(
        flops=int(flops),
        transcendentals=int(Bp * Lp),
        bytes_accessed=int(weight_bytes + n_tiles * (stream_in + stream_out)),
    )

    lat, px = pl.pallas_call(
        _vae_forward_kernel,
        out_shape=out_shape,
        grid=(n_tiles,),
        in_specs=in_specs,
        out_specs=out_specs,
        compiler_params=pltpu.CompilerParams(
            dimension_semantics=("parallel",),
            vmem_limit_bytes=vmem_bytes),
        cost_estimate=cost,
    )(xp, epsp, *weights)

    # ---- un-pad / split slabs and upcast to f32 in the wrapper ----
    qz_mu = lat[:B, 0:L].astype(f32)
    qz_ls = lat[:B, Lp:Lp + L].astype(f32)
    z = lat[:B, 2 * Lp:2 * Lp + L].astype(f32)
    px_mu = px[:B, :D].astype(f32)
    px_ls = px[:B, Dp:Dp + D].astype(f32)

    # prior p(z) = N(0, I): zero buffer chunked into mu / log_sigma
    pz_mu = jnp.zeros((B, L), f32)
    pz_ls = jnp.zeros((B, L), f32)

    return {"px": (px_mu, px_ls), "pz": (pz_mu, pz_ls), "qz": (qz_mu, qz_ls), "z": z}


# --------------------------- references & test harness ---------------------------

def _reference_forward_f32(x_nchw, eps, params):
    """Pure-JAX f32 reference (matches the PyTorch module semantics)."""
    B = x_nchw.shape[0]
    x = x_nchw.reshape(B, -1).astype(jnp.float32)
    w1, b1, w2, b2, w3, b3, w4, b4 = params
    h1 = jnp.maximum(x @ w1 + b1, 0.0)
    h_x = h1 @ w2 + b2
    L = eps.shape[1]
    mu, log_sigma = h_x[:, :L], h_x[:, L:]
    z = mu + jnp.exp(log_sigma) * eps
    d1 = jnp.maximum(z @ w3 + b3, 0.0)
    d = d1 @ w4 + b4
    D = x.shape[1]
    return mu, log_sigma, z, d[:, :D], d[:, D:]


def _reference_forward_bf16(x_nchw, eps, params):
    """Precision-matched reference: bf16 matmul operands, f32 accumulation."""
    bf16 = jnp.bfloat16
    B = x_nchw.shape[0]
    x = x_nchw.reshape(B, -1).astype(jnp.float32)
    w1, b1, w2, b2, w3, b3, w4, b4 = params
    L = eps.shape[1]
    D = x.shape[1]

    def mm(a, b):
        return jnp.dot(a.astype(bf16), b.astype(bf16), preferred_element_type=jnp.float32)

    h1 = jnp.maximum(mm(x, w1) + b1, 0.0)
    mu = mm(h1, w2[:, :L]) + b2[:, :L]
    log_sigma = mm(h1, w2[:, L:]) + b2[:, L:]
    z = mu + jnp.exp(log_sigma) * eps
    d1 = jnp.maximum(mm(z, w3) + b3, 0.0)
    d = mm(d1, w4) + b4
    return mu, log_sigma, z, d[:, :D], d[:, D:]


def _init_params(key, D, HID, L):
    ks = jax.random.split(key, 8)
    s = 0.05
    w1 = jax.random.normal(ks[0], (D, HID), jnp.float32) * s
    b1 = jax.random.normal(ks[1], (1, HID), jnp.float32) * s
    w2 = jax.random.normal(ks[2], (HID, 2 * L), jnp.float32) * s
    b2 = jax.random.normal(ks[3], (1, 2 * L), jnp.float32) * s
    w3 = jax.random.normal(ks[4], (L, HID), jnp.float32) * s
    b3 = jax.random.normal(ks[5], (1, HID), jnp.float32) * s
    w4 = jax.random.normal(ks[6], (HID, 2 * D), jnp.float32) * s
    b4 = jax.random.normal(ks[7], (1, 2 * D), jnp.float32) * s
    return (w1, b1, w2, b2, w3, b3, w4, b4)


if __name__ == "__main__":
    key = jax.random.PRNGKey(0)
    k_x, k_eps, k_p = jax.random.split(key, 3)

    B, C, H, W = 2, 4, 16, 16          # NCHW input
    D = C * H * W                      # 1024 flattened features
    HID = 64                           # MLP hidden width
    L = 16                             # latent_features

    x = jax.random.normal(k_x, (B, C, H, W), jnp.float32)
    eps = jax.random.normal(k_eps, (B, L), jnp.float32)   # reparameterization noise
    params = _init_params(k_p, D, HID, L)

    # one-time weight prep (outside the jitted forward)
    prepared = jax.block_until_ready(prepare_params(params, L))

    fwd = jax.jit(vae_forward)
    out = fwd(x, eps, prepared)
    jax.block_until_ready(out)

    got = (out["qz"][0], out["qz"][1], out["z"], out["px"][0], out["px"][1])

    # tight check against a precision-matched reference (bf16 matmul operands,
    # f32 accumulation, outputs quantized to bf16 like the kernel's output slabs)
    ref_bf16 = _reference_forward_bf16(x, eps, params)
    for g, r in zip(got, ref_bf16):
        r_q = np.asarray(jnp.asarray(r).astype(jnp.bfloat16).astype(jnp.float32))
        np.testing.assert_allclose(np.asarray(g), r_q, rtol=2e-2, atol=2e-2)

    # loose semantic check against the full-f32 reference
    ref_f32 = _reference_forward_f32(x, eps, params)
    for g, r in zip(got, ref_f32):
        np.testing.assert_allclose(np.asarray(g), np.asarray(r), rtol=1e-1, atol=1e-1)

    assert out["pz"][0].shape == (B, L) and out["pz"][1].shape == (B, L)

    print("KERNEL_OK")
</pallas_src>

<mosaic_0001>
module attributes {stable_mosaic.version = 11 : i64} {
  func.func @_vae_forward_kernel(%arg0: i32, %arg1: memref<16x1024xbf16, #tpu.memory_space<vmem>>, %arg2: memref<16x128xf32, #tpu.memory_space<vmem>>, %arg3: memref<1024x128xbf16, #tpu.memory_space<vmem>>, %arg4: memref<1x128xf32, #tpu.memory_space<vmem>>, %arg5: memref<128x256xbf16, #tpu.memory_space<vmem>>, %arg6: memref<1x256xf32, #tpu.memory_space<vmem>>, %arg7: memref<128x128xbf16, #tpu.memory_space<vmem>>, %arg8: memref<1x128xf32, #tpu.memory_space<vmem>>, %arg9: memref<128x2048xbf16, #tpu.memory_space<vmem>>, %arg10: memref<1x2048xf32, #tpu.memory_space<vmem>>, %arg11: memref<16x384xbf16, #tpu.memory_space<vmem>>, %arg12: memref<16x2048xbf16, #tpu.memory_space<vmem>>) attributes {dimension_semantics = [#tpu.dimension_semantics<parallel>], iteration_bounds = array<i64: 1>, scalar_prefetch = 0 : i64, scratch_operands = 0 : i64, tpu.core_type = #tpu.core_type<tc>, window_params = [{transform_indices = @transform_0, window_bounds = array<i64: 16, 1024>}, {transform_indices = @transform_1, window_bounds = array<i64: 16, 128>}, {pipeline_mode = #tpu.pipeline_mode<synchronous>, transform_indices = @transform_2, window_bounds = array<i64: 1024, 128>}, {pipeline_mode = #tpu.pipeline_mode<synchronous>, transform_indices = @transform_3, window_bounds = array<i64: 1, 128>}, {pipeline_mode = #tpu.pipeline_mode<synchronous>, transform_indices = @transform_4, window_bounds = array<i64: 128, 256>}, {pipeline_mode = #tpu.pipeline_mode<synchronous>, transform_indices = @transform_5, window_bounds = array<i64: 1, 256>}, {pipeline_mode = #tpu.pipeline_mode<synchronous>, transform_indices = @transform_6, window_bounds = array<i64: 128, 128>}, {pipeline_mode = #tpu.pipeline_mode<synchronous>, transform_indices = @transform_7, window_bounds = array<i64: 1, 128>}, {pipeline_mode = #tpu.pipeline_mode<synchronous>, transform_indices = @transform_8, window_bounds = array<i64: 128, 2048>}, {pipeline_mode = #tpu.pipeline_mode<synchronous>, transform_indices = @transform_9, window_bounds = array<i64: 1, 2048>}, {transform_indices = @transform_10, window_bounds = array<i64: 16, 384>}, {transform_indices = @transform_11, window_bounds = array<i64: 16, 2048>}]} {
    %c0 = arith.constant 0 : index
    %c0_0 = arith.constant 0 : index
    %0 = vector.load %arg1[%c0, %c0_0] : memref<16x1024xbf16, #tpu.memory_space<vmem>>, vector<16x1024xbf16>
    %c0_1 = arith.constant 0 : index
    %c0_2 = arith.constant 0 : index
    %1 = vector.load %arg3[%c0_1, %c0_2] : memref<1024x128xbf16, #tpu.memory_space<vmem>>, vector<1024x128xbf16>
    %cst = arith.constant dense<0.000000e+00> : vector<16x128xf32>
    %2 = tpu.matmul %0, %1, %cst {dimension_numbers = #tpu.dot_dimension_numbers<[1], [0], [0], [1], [0, 0, 1, 1], [], []>} : vector<16x1024xbf16>, vector<1024x128xbf16>, vector<16x128xf32> -> vector<16x128xf32>
    %c0_3 = arith.constant 0 : index
    %c0_4 = arith.constant 0 : index
    %3 = vector.load %arg4[%c0_3, %c0_4] : memref<1x128xf32, #tpu.memory_space<vmem>>, vector<1x128xf32>
    %4 = vector.broadcast %3 : vector<1x128xf32> to vector<16x128xf32>
    %5 = arith.addf %2, %4 : vector<16x128xf32>
    %cst_5 = arith.constant 0.000000e+00 : f32
    %6 = vector.broadcast %cst_5 : f32 to vector<16x128xf32>
    %7 = arith.maximumf %5, %6 : vector<16x128xf32>
    %8 = arith.truncf %7 : vector<16x128xf32> to vector<16x128xbf16>
    %c0_6 = arith.constant 0 : index
    %c0_7 = arith.constant 0 : index
    %9 = vector.load %arg5[%c0_6, %c0_7] : memref<128x256xbf16, #tpu.memory_space<vmem>>, vector<128x256xbf16>
    %cst_8 = arith.constant dense<0.000000e+00> : vector<16x256xf32>
    %10 = tpu.matmul %8, %9, %cst_8 {dimension_numbers = #tpu.dot_dimension_numbers<[1], [0], [0], [1], [0, 0, 1, 1], [], []>} : vector<16x128xbf16>, vector<128x256xbf16>, vector<16x256xf32> -> vector<16x256xf32>
    %c0_9 = arith.constant 0 : index
    %c0_10 = arith.constant 0 : index
    %11 = vector.load %arg6[%c0_9, %c0_10] : memref<1x256xf32, #tpu.memory_space<vmem>>, vector<1x256xf32>
    %12 = vector.broadcast %11 : vector<1x256xf32> to vector<16x256xf32>
    %13 = arith.addf %10, %12 : vector<16x256xf32>
    %14 = vector.extract_strided_slice %13 {offsets = [0, 0], sizes = [16, 128], strides = [1, 1]} : vector<16x256xf32> to vector<16x128xf32>
    %15 = vector.extract_strided_slice %13 {offsets = [0, 128], sizes = [16, 128], strides = [1, 1]} : vector<16x256xf32> to vector<16x128xf32>
    %16 = math.exp %15 : vector<16x128xf32>
    %c0_11 = arith.constant 0 : index
    %c0_12 = arith.constant 0 : index
    %17 = vector.load %arg2[%c0_11, %c0_12] : memref<16x128xf32, #tpu.memory_space<vmem>>, vector<16x128xf32>
    %18 = arith.mulf %16, %17 : vector<16x128xf32>
    %19 = arith.addf %14, %18 : vector<16x128xf32>
    %20 = arith.truncf %13 : vector<16x256xf32> to vector<16x256xbf16>
    %c0_13 = arith.constant 0 : index
    %c0_14 = arith.constant 0 : index
    %21 = vector.load %arg11[%c0_13, %c0_14] : memref<16x384xbf16, #tpu.memory_space<vmem>>, vector<16x256xbf16>
    tpu.vector_store %arg11[%c0_13, %c0_14], %20 {strides = array<i32>} : memref<16x384xbf16, #tpu.memory_space<vmem>>, vector<16x256xbf16>,
    %22 = arith.truncf %19 : vector<16x128xf32> to vector<16x128xbf16>
    %c0_15 = arith.constant 0 : index
    %c256 = arith.constant 256 : index
    %23 = vector.load %arg11[%c0_15, %c256] : memref<16x384xbf16, #tpu.memory_space<vmem>>, vector<16x128xbf16>
    tpu.vector_store %arg11[%c0_15, %c256], %22 {strides = array<i32>} : memref<16x384xbf16, #tpu.memory_space<vmem>>, vector<16x128xbf16>,
    %24 = arith.truncf %19 : vector<16x128xf32> to vector<16x128xbf16>
    %c0_16 = arith.constant 0 : index
    %c0_17 = arith.constant 0 : index
    %25 = vector.load %arg7[%c0_16, %c0_17] : memref<128x128xbf16, #tpu.memory_space<vmem>>, vector<128x128xbf16>
    %cst_18 = arith.constant dense<0.000000e+00> : vector<16x128xf32>
    %26 = tpu.matmul %24, %25, %cst_18 {dimension_numbers = #tpu.dot_dimension_numbers<[1], [0], [0], [1], [0, 0, 1, 1], [], []>} : vector<16x128xbf16>, vector<128x128xbf16>, vector<16x128xf32> -> vector<16x128xf32>
    %c0_19 = arith.constant 0 : index
    %c0_20 = arith.constant 0 : index
    %27 = vector.load %arg8[%c0_19, %c0_20] : memref<1x128xf32, #tpu.memory_space<vmem>>, vector<1x128xf32>
    %28 = vector.broadcast %27 : vector<1x128xf32> to vector<16x128xf32>
    %29 = arith.addf %26, %28 : vector<16x128xf32>
    %cst_21 = arith.constant 0.000000e+00 : f32
    %30 = vector.broadcast %cst_21 : f32 to vector<16x128xf32>
    %31 = arith.maximumf %29, %30 : vector<16x128xf32>
    %32 = arith.truncf %31 : vector<16x128xf32> to vector<16x128xbf16>
    %c0_22 = arith.constant 0 : index
    %c0_23 = arith.constant 0 : index
    %33 = vector.load %arg9[%c0_22, %c0_23] : memref<128x2048xbf16, #tpu.memory_space<vmem>>, vector<128x2048xbf16>
    %cst_24 = arith.constant dense<0.000000e+00> : vector<16x2048xf32>
    %34 = tpu.matmul %32, %33, %cst_24 {dimension_numbers = #tpu.dot_dimension_numbers<[1], [0], [0], [1], [0, 0, 1, 1], [], []>} : vector<16x128xbf16>, vector<128x2048xbf16>, vector<16x2048xf32> -> vector<16x2048xf32>
    %c0_25 = arith.constant 0 : index
    %c0_26 = arith.constant 0 : index
    %35 = vector.load %arg10[%c0_25, %c0_26] : memref<1x2048xf32, #tpu.memory_space<vmem>>, vector<1x2048xf32>
    %36 = vector.broadcast %35 : vector<1x2048xf32> to vector<16x2048xf32>
    %37 = arith.addf %34, %36 : vector<16x2048xf32>
    %38 = arith.truncf %37 : vector<16x2048xf32> to vector<16x2048xbf16>
    %c0_27 = arith.constant 0 : index
    %c0_28 = arith.constant 0 : index
    %39 = vector.load %arg12[%c0_27, %c0_28] : memref<16x2048xbf16, #tpu.memory_space<vmem>>, vector<16x2048xbf16>
    tpu.vector_store %arg12[%c0_27, %c0_28], %38 {strides = array<i32>} : memref<16x2048xbf16, #tpu.memory_space<vmem>>, vector<16x2048xbf16>,
    return
  }
  func.func @transform_0(%arg0: i32) -> (i32, i32) {
    %c0_i32 = arith.constant 0 : i32
    %c0_i32_0 = arith.constant 0 : i32
    return %arg0, %c0_i32 : i32, i32
  }
  func.func @transform_1(%arg0: i32) -> (i32, i32) {
    %c0_i32 = arith.constant 0 : i32
    %c0_i32_0 = arith.constant 0 : i32
    return %arg0, %c0_i32 : i32, i32
  }
  func.func @transform_2(%arg0: i32) -> (i32, i32) {
    %c0_i32 = arith.constant 0 : i32
    %c0_i32_0 = arith.constant 0 : i32
    %c0_i32_1 = arith.constant 0 : i32
    return %c0_i32, %c0_i32_0 : i32, i32
  }
  func.func @transform_3(%arg0: i32) -> (i32, i32) {
    %c0_i32 = arith.constant 0 : i32
    %c0_i32_0 = arith.constant 0 : i32
    %c0_i32_1 = arith.constant 0 : i32
    return %c0_i32, %c0_i32_0 : i32, i32
  }
  func.func @transform_4(%arg0: i32) -> (i32, i32) {
    %c0_i32 = arith.constant 0 : i32
    %c0_i32_0 = arith.constant 0 : i32
    %c0_i32_1 = arith.constant 0 : i32
    return %c0_i32, %c0_i32_0 : i32, i32
  }
  func.func @transform_5(%arg0: i32) -> (i32, i32) {
    %c0_i32 = arith.constant 0 : i32
    %c0_i32_0 = arith.constant 0 : i32
    %c0_i32_1 = arith.constant 0 : i32
    return %c0_i32, %c0_i32_0 : i32, i32
  }
  func.func @transform_6(%arg0: i32) -> (i32, i32) {
    %c0_i32 = arith.constant 0 : i32
    %c0_i32_0 = arith.constant 0 : i32
    %c0_i32_1 = arith.constant 0 : i32
    return %c0_i32, %c0_i32_0 : i32, i32
  }
  func.func @transform_7(%arg0: i32) -> (i32, i32) {
    %c0_i32 = arith.constant 0 : i32
    %c0_i32_0 = arith.constant 0 : i32
    %c0_i32_1 = arith.constant 0 : i32
    return %c0_i32, %c0_i32_0 : i32, i32
  }
  func.func @transform_8(%arg0: i32) -> (i32, i32) {
    %c0_i32 = arith.constant 0 : i32
    %c0_i32_0 = arith.constant 0 : i32
    %c0_i32_1 = arith.constant 0 : i32
    return %c0_i32, %c0_i32_0 : i32, i32
  }
  func.func @transform_9(%arg0: i32) -> (i32, i32) {
    %c0_i32 = arith.constant 0 : i32
    %c0_i32_0 = arith.constant 0 : i32
    %c0_i32_1 = arith.constant 0 : i32
    return %c0_i32, %c0_i32_0 : i32, i32
  }
  func.func @transform_10(%arg0: i32) -> (i32, i32) {
    %c0_i32 = arith.constant 0 : i32
    %c0_i32_0 = arith.constant 0 : i32
    return %arg0, %c0_i32 : i32, i32
  }
  func.func @transform_11(%arg0: i32) -> (i32, i32) {
    %c0_i32 = arith.constant 0 : i32
    %c0_i32_0 = arith.constant 0 : i32
    return %arg0, %c0_i32 : i32, i32
  }
}

</mosaic_0001>

<bundles_post_ra>
// kernel: vae_forward.1
= control target key start
LH: loop header
LB: loop body
LE: loop exit
PB: predicated region body
PF: predicated region fallthrough
CT: control target
= control target key end

     0   :  { %17 = vsyncpa [#allocation3], 0  ;;  %s3284_s0 = inlined_call_operand.vmem [shape: bf16[16,1024], index: 0, kind: input, shape index: {}]   ;;  %s3285_s1 = inlined_call_operand.vmem [shape: f32[16,128], index: 1, kind: input, shape index: {}]   ;;  %s3286_s2 = inlined_call_operand.hbm [shape: bf16[1024,128], index: 2, kind: input, shape index: {}]   ;;  %s3287_s3 = inlined_call_operand.vmem [shape: f32[1,128], index: 3, kind: input, shape index: {}]   ;;  %s3288_s4 = inlined_call_operand.vmem [shape: bf16[128,256], index: 4, kind: input, shape index: {}]   ;;  %s3289_s5 = inlined_call_operand.vmem [shape: f32[1,256], index: 5, kind: input, shape index: {}]   ;;  %s3290_s6 = inlined_call_operand.vmem [shape: bf16[128,128], index: 6, kind: input, shape index: {}]   ;;  %s3291_s7 = inlined_call_operand.vmem [shape: f32[1,128], index: 7, kind: input, shape index: {}]   ;;  %s3292_s8 = inlined_call_operand.hbm [shape: bf16[128,2048], index: 8, kind: input, shape index: {}]   ;;  %s3293_s9 = inlined_call_operand.vmem [shape: f32[1,2048], index: 9, kind: input, shape index: {}]   ;;  %s3294_s10 = inlined_call_operand.vmem [shape: bf16[16,384], index: 10, kind: output, shape index: {0}]   ;;  %s3295_s11 = inlined_call_operand.vmem [shape: bf16[16,2048], index: 11, kind: output, shape index: {1}]  }
   0x1   :  { %18 = vsyncpa [#allocation5], 0  ;;  %s2957_s17 = smov [#allocation2]   ;;  %s2909_s21 = scalar_lea.hbm %s3286_s2, 8192 }
   0x2   :  { %s28_s18 = sshll.u32 %s2957_s17, 4  ;;  %p2910_p0 = scmp.ne.s32.totalorder %s3286_s2, %s2909_s21  ;;  %s29_s18 = int_to_ptr.vmem [resolvable:$true] %s28_s18 }
   0x3   :  { %p2913_p1 = scmp.lt.u32.totalorder %s2909_s21, %s3286_s2 }
   0x5   :  { %p2915_p2 = pnand %p2913_p1, %p2910_p0 }
   0x7   :  { %2918 = shalt.err (!%p2915_p2)
}
   0x8   :  { %s2919_s26 = scalar_lea.vmem %s29_s18, 8192  ;;  %p2924_p4 = scmp.lt.s32.totalorder %s29_s18, %s29_s18 }
   0x9   :  { %p2920_p3 = scmp.ne.s32.totalorder %s29_s18, %s2919_s26  ;;  %p2925_p5 = scmp.lt.s32.totalorder %s2919_s26, %s2919_s26 }
   0xb   :  { %p2926_p6 = por %p2925_p5, %p2924_p4 }
   0xd   :  { %p2927_p7 = pnand %p2926_p6, %p2920_p3 }
   0xf   :  { %2930 = shalt.err (!%p2927_p7)
}
  0x10   :  { %s2958_s27 = smov 64   ;;  %s2959_s28 = smov 4  }
  0x11   :  { %34 = dma.hbm_to_vmem [thread:$0]  %s3286_s2, 8192, %s29_s18, [#allocation3], %s2958_s27, %s2958_s27, %s2959_s28  }
  0x12   :  { %s2960_s12 = smov [#allocation4]   ;;  %s2931_s16 = scalar_lea.hbm %s3292_s8, 16384 }
  0x13   :  { %s50_s13 = sshll.u32 %s2960_s12, 4  ;;  %p2932_p8 = scmp.ne.s32.totalorder %s3292_s8, %s2931_s16  ;;  %s51_s13 = int_to_ptr.vmem [resolvable:$true] %s50_s13 }
  0x14   :  { %p2935_p9 = scmp.lt.u32.totalorder %s2931_s16, %s3292_s8 }
  0x16   :  { %p2937_p10 = pnand %p2935_p9, %p2932_p8 }
  0x18   :  { %2940 = shalt.err (!%p2937_p10)
}
  0x19   :  { %s2941_s22 = scalar_lea.vmem %s51_s13, 16384  ;;  %p2946_p12 = scmp.lt.s32.totalorder %s51_s13, %s51_s13 }
  0x1a   :  { %p2942_p11 = scmp.ne.s32.totalorder %s51_s13, %s2941_s22  ;;  %p2947_p13 = scmp.lt.s32.totalorder %s2941_s22, %s2941_s22 }
  0x1c   :  { %p2948_p0 = por %p2947_p13, %p2946_p12 }
  0x1e   :  { %p2949_p1 = pnand %p2948_p0, %p2942_p11 }
  0x20   :  { %2952 = shalt.err (!%p2949_p1)
}
  0x21   :  { %s2961_s2 = smov 1024  }
  0x22   :  { %56 = dma.hbm_to_vmem [thread:$0]  %s3292_s8, 16384, %s51_s13, [#allocation5], %s2961_s2, %s2961_s2, %s2958_s27  }
  0x23   :  { %2953 = dma.done.wait [#allocation3], 8192  }
  0x24   :  { %2954 = vsyncadd [#allocation3], 4294959104 }
  0x25   :  { %2955 = dma.done.wait [#allocation5], 16384  }
  0x26   :  { %2956 = vsyncadd [#allocation5], 4294950912  ;;  %v2809_v0 = vld [vmem:[#allocation2 + $0x40] sm:$0xff]   ;;  %v2813_v4 = vld [vmem:[#allocation2 + $0x48] sm:$0xff]   ;;  %vm2964_vm0 = vmmov 0  }
  0x27   :  { %v2810_v1 = vld [vmem:[#allocation2 + $0xc0] sm:$0xff]   ;;  %2684 = vmatprep.subr.bf16.mxu0 %v2809_v0  ;;  %v2814_v5 = vld [vmem:[#allocation2 + $0xc8] sm:$0xff]   ;;  %v2817_v8 = vld [vmem:[#allocation2 + $0x50] sm:$0xff]  }
  0x28   :  { %v2811_v2 = vld [vmem:[#allocation2] sm:$0xff]   ;;  %2706 = vmatprep.subr.bf16.mxu1 %v2810_v1  ;;  %v2815_v6 = vld [vmem:[#allocation2 + $0x8] sm:$0xff]   ;;  %v2818_v9 = vld [vmem:[#allocation2 + $0xd0] sm:$0xff]  }
  0x29   :  { %v2812_v3 = vld [vmem:[#allocation2 + $0x80] sm:$0xff]   ;;  %2685 = vmatpush3.bf16.msra.mxu0 %v2811_v2  ;;  %v2816_v7 = vld [vmem:[#allocation2 + $0x88] sm:$0xff]   ;;  %v2819_v10 = vld [vmem:[#allocation2 + $0x10] sm:$0xff]  }
  0x2a   :  { %2707 = vmatpush3.bf16.msra.mxu1 %v2812_v3  ;;  %2686 = vmatprep.subr.bf16.mxu0 %v2813_v4  ;;  %v2820_v11 = vld [vmem:[#allocation2 + $0x90] sm:$0xff]   ;;  %v2821_v12 = vld [vmem:[#allocation2 + $0x58] sm:$0xff]   ;;  %v2825_v16 = vld [vmem:[#allocation2 + $0x60] sm:$0xff]  }
  0x2b   :  { %2708 = vmatprep.subr.bf16.mxu1 %v2814_v5  ;;  %v2822_v13 = vld [vmem:[#allocation2 + $0xd8] sm:$0xff]   ;;  %v2826_v17 = vld [vmem:[#allocation2 + $0xe0] sm:$0xff]   ;;  %v2829_v20 = vld [vmem:[#allocation2 + $0x68] sm:$0xff]  }
  0x2c   :  { %v2823_v14 = vld [vmem:[#allocation2 + $0x18] sm:$0xff]   ;;  %v2827_v18 = vld [vmem:[#allocation2 + $0x20] sm:$0xff]   ;;  %v2830_v21 = vld [vmem:[#allocation2 + $0xe8] sm:$0xff]  }
  0x2d   :  { %2687 = vmatpush3.bf16.msra.mxu0 %v2815_v6  ;;  %v2824_v15 = vld [vmem:[#allocation2 + $0x98] sm:$0xff]   ;;  %v2828_v19 = vld [vmem:[#allocation2 + $0xa0] sm:$0xff]   ;;  %v2831_v22 = vld [vmem:[#allocation2 + $0x28] sm:$0xff]  }
  0x2e   :  { %2709 = vmatpush3.bf16.msra.mxu1 %v2816_v7  ;;  %2688 = vmatprep.subr.bf16.mxu0 %v2817_v8  ;;  %v2832_v23 = vld [vmem:[#allocation2 + $0xa8] sm:$0xff]   ;;  %v2833_v24 = vld [vmem:[#allocation2 + $0x70] sm:$0xff]   ;;  %v2837_v28 = vld [vmem:[#allocation2 + $0x78] sm:$0xff]  }
  0x2f   :  { %2710 = vmatprep.subr.bf16.mxu1 %v2818_v9  ;;  %v2834_v25 = vld [vmem:[#allocation2 + $0xf0] sm:$0xff]   ;;  %v2838_v29 = vld [vmem:[#allocation2 + $0xf8] sm:$0xff]   ;;  %v66_v32 = vld [vmem:[%s3284_s0] sm:$0xff] }
  0x30   :  { %v2835_v26 = vld [vmem:[#allocation2 + $0x30] sm:$0xff]   ;;  %v2839_v30 = vld [vmem:[#allocation2 + $0x38] sm:$0xff]   ;;  %v70_v33 = vld [vmem:[%s3284_s0 + $0x20] sm:$0xff] }
  0x31   :  { %2689 = vmatpush3.bf16.msra.mxu0 %v2819_v10  ;;  %v2836_v27 = vld [vmem:[#allocation2 + $0xb0] sm:$0xff]   ;;  %v2840_v31 = vld [vmem:[#allocation2 + $0xb8] sm:$0xff]   ;;  %v67_v34 = vld [vmem:[%s3284_s0 + $0x8] sm:$0xff]  ;;  %v2419_v35 = vcombine.low %v66_v32, %v70_v33  ;;  %v2420_v36 = vcombine.high %v66_v32, %v70_v33  ;;  %v2962_v32 = vmov 0  }
  0x32   :  { %2711 = vmatpush3.bf16.msra.mxu1 %v2820_v11  ;;  %2690 = vmatprep.subr.bf16.mxu0 %v2821_v12  ;;  %v71_v37 = vld [vmem:[%s3284_s0 + $0x28] sm:$0xff]  ;;  %v2841_v40 = vld [vmem:[#allocation2 + $0x140] sm:$0xff]   ;;  %v2849_v48 = vld [vmem:[#allocation2 + $0x150] sm:$0xff]  }
  0x33   :  { %2712 = vmatprep.subr.bf16.mxu1 %v2822_v13  ;;  %v2421_v38 = vcombine.low %v67_v34, %v71_v37  ;;  %v2422_v39 = vcombine.high %v67_v34, %v71_v37  ;;  %665 = vmatprep.mubr.bf16.mxu0 %v2420_v36  ;;  %v2842_v41 = vld [vmem:[#allocation2 + $0x1c0] sm:$0xff]   ;;  %v2845_v44 = vld [vmem:[#allocation2 + $0x148] sm:$0xff]   ;;  %v2850_v49 = vld [vmem:[#allocation2 + $0x1d0] sm:$0xff]   ;;  %v2963_v34 = vmov 0.0  }
  0x34   :  { %v2843_v42 = vld [vmem:[#allocation2 + $0x100] sm:$0xff]   ;;  %v2846_v45 = vld [vmem:[#allocation2 + $0x1c8] sm:$0xff]   ;;  %v2851_v50 = vld [vmem:[#allocation2 + $0x110] sm:$0xff]  }
  0x35   :  { %2691 = vmatpush3.bf16.msra.mxu0 %v2823_v14  ;;  %706 = vmatprep.mubr.bf16.mxu1 %v2422_v39  ;;  %v2844_v43 = vld [vmem:[#allocation2 + $0x180] sm:$0xff]   ;;  %v2847_v46 = vld [vmem:[#allocation2 + $0x108] sm:$0xff]   ;;  %v2852_v51 = vld [vmem:[#allocation2 + $0x190] sm:$0xff]  }
  0x36   :  { %2713 = vmatpush3.bf16.msra.mxu1 %v2824_v15  ;;  %2692 = vmatprep.subr.bf16.mxu0 %v2825_v16  ;;  %v2848_v47 = vld [vmem:[#allocation2 + $0x188] sm:$0xff]   ;;  %v2853_v52 = vld [vmem:[#allocation2 + $0x158] sm:$0xff]   ;;  %v2857_v56 = vld [vmem:[#allocation2 + $0x160] sm:$0xff]  }
  0x37   :  { %2714 = vmatprep.subr.bf16.mxu1 %v2826_v17  ;;  %v2854_v53 = vld [vmem:[#allocation2 + $0x1d8] sm:$0xff]   ;;  %v2858_v57 = vld [vmem:[#allocation2 + $0x1e0] sm:$0xff]   ;;  %v2861_v60 = vld [vmem:[#allocation2 + $0x168] sm:$0xff]  }
  0x38   :  { %v2855_v54 = vld [vmem:[#allocation2 + $0x118] sm:$0xff]   ;;  %v2859_v58 = vld [vmem:[#allocation2 + $0x120] sm:$0xff]   ;;  %v2862_v61 = vld [vmem:[#allocation2 + $0x1e8] sm:$0xff]  }
  0x39   :  { %2693 = vmatpush3.bf16.msra.mxu0 %v2827_v18  ;;  %v2856_v55 = vld [vmem:[#allocation2 + $0x198] sm:$0xff]   ;;  %v2860_v59 = vld [vmem:[#allocation2 + $0x1a0] sm:$0xff]   ;;  %v2863_v62 = vld [vmem:[#allocation2 + $0x128] sm:$0xff]  }
  0x3a   :  { %2715 = vmatpush3.bf16.msra.mxu1 %v2828_v19  ;;  %2694 = vmatprep.subr.bf16.mxu0 %v2829_v20  ;;  %v2864_v63 = vld [vmem:[#allocation2 + $0x1a8] sm:$0xff]   ;;  %v2865_v0 = vld [vmem:[#allocation2 + $0x170] sm:$0xff]   ;;  %v2869_v4 = vld [vmem:[#allocation2 + $0x178] sm:$0xff]  }
  0x3b   :  { %2716 = vmatprep.subr.bf16.mxu1 %v2830_v21  ;;  %v2866_v1 = vld [vmem:[#allocation2 + $0x1f0] sm:$0xff]   ;;  %v2870_v5 = vld [vmem:[#allocation2 + $0x1f8] sm:$0xff]   ;;  %v2873_v16 = vld [vmem:[%s3288_s4] ss:$8 sps:$4 sm:$0xff]  }
  0x3c   :  { %v2867_v2 = vld [vmem:[#allocation2 + $0x130] sm:$0xff]   ;;  %v2871_v6 = vld [vmem:[#allocation2 + $0x138] sm:$0xff]   ;;  %v2875_v17 = vld [vmem:[%s3288_s4 + $0x4] ss:$8 sps:$4 sm:$0xff]  }
  0x3d   :  { %2695 = vmatpush3.bf16.msra.mxu0 %v2831_v22  ;;  %v2868_v3 = vld [vmem:[#allocation2 + $0x1b0] sm:$0xff]   ;;  %v2872_v7 = vld [vmem:[#allocation2 + $0x1b8] sm:$0xff]   ;;  %v2881_v20 = vld [vmem:[%s3288_s4 + $0x24] ss:$8 sps:$4 sm:$0xff]  }
  0x3e   :  { %2717 = vmatpush3.bf16.msra.mxu1 %v2832_v23  ;;  %2696 = vmatprep.subr.bf16.mxu0 %v2833_v24  ;;  %v68_v8 = vld [vmem:[%s3284_s0 + $0x10] sm:$0xff]  ;;  %v69_v12 = vld [vmem:[%s3284_s0 + $0x18] sm:$0xff]  ;;  %v2879_v21 = vld [vmem:[%s3288_s4 + $0x20] ss:$8 sps:$4 sm:$0xff]  }
  0x3f   :  { %2718 = vmatprep.subr.bf16.mxu1 %v2834_v25  ;;  %v72_v9 = vld [vmem:[%s3284_s0 + $0x30] sm:$0xff]  ;;  %v73_v13 = vld [vmem:[%s3284_s0 + $0x38] sm:$0xff]  ;;  %v2887_v24 = vld [vmem:[%s3288_s4 + $0x44] ss:$8 sps:$4 sm:$0xff]  }
  0x40   :  { %v2423_v10 = vcombine.low %v68_v8, %v72_v9  ;;  %v2424_v11 = vcombine.high %v68_v8, %v72_v9  ;;  %v2425_v14 = vcombine.low %v69_v12, %v73_v13  ;;  %v2426_v15 = vcombine.high %v69_v12, %v73_v13  ;;  %v2878_v18 = vld [vmem:[%s3288_s4 + $0x14] ss:$8 sps:$4 sm:$0xff]   ;;  %v2876_v19 = vld [vmem:[%s3288_s4 + $0x10] ss:$8 sps:$4 sm:$0xff]   ;;  %v2885_v25 = vld [vmem:[%s3288_s4 + $0x40] ss:$8 sps:$4 sm:$0xff]  }
  0x41   :  { %2697 = vmatpush3.bf16.msra.mxu0 %v2835_v26  ;;  %v2884_v22 = vld [vmem:[%s3288_s4 + $0x34] ss:$8 sps:$4 sm:$0xff]   ;;  %v2882_v23 = vld [vmem:[%s3288_s4 + $0x30] ss:$8 sps:$4 sm:$0xff]   ;;  %v2897_v33 = vld [vmem:[%s3290_s6] sm:$0xff]  }
  0x42   :  { %2719 = vmatpush3.bf16.msra.mxu1 %v2836_v27  ;;  %2698 = vmatprep.subr.bf16.mxu0 %v2837_v28  ;;  %v2890_v26 = vld [vmem:[%s3288_s4 + $0x54] ss:$8 sps:$4 sm:$0xff]   ;;  %v2888_v27 = vld [vmem:[%s3288_s4 + $0x50] ss:$8 sps:$4 sm:$0xff]   ;;  %v2893_v28 = vld [vmem:[%s3288_s4 + $0x64] ss:$8 sps:$4 sm:$0xff]  }
  0x43   :  { %2720 = vmatprep.subr.bf16.mxu1 %v2838_v29  ;;  %v2891_v29 = vld [vmem:[%s3288_s4 + $0x60] ss:$8 sps:$4 sm:$0xff]   ;;  %v2899_v8 = vld [vmem:[%s3290_s6 + $0x10] sm:$0xff]   ;;  %v2900_v9 = vld [vmem:[%s3290_s6 + $0x18] sm:$0xff]  }
  0x44   :  { %v2903_v12 = vld [vmem:[%s3290_s6 + $0x30] sm:$0xff]   ;;  %v2904_v13 = vld [vmem:[%s3290_s6 + $0x38] sm:$0xff]  }
  0x45   :  { %2699 = vmatpush3.bf16.msra.mxu0 %v2839_v30  ;;  %v2896_v30 = vld [vmem:[%s3288_s4 + $0x74] ss:$8 sps:$4 sm:$0xff]  }
  0x46   :  { %2721 = vmatpush3.bf16.msra.mxu1 %v2840_v31  ;;  %2728 = vmatprep.subr.bf16.mxu0 %v2841_v40  ;;  %v2894_v31 = vld [vmem:[%s3288_s4 + $0x70] ss:$8 sps:$4 sm:$0xff]  }
  0x47   :  { %2750 = vmatprep.subr.bf16.mxu1 %v2842_v41 }
  0x48   :  { %666 = vmatmul.mubr.bf16.vlgmr.msra.gmra.mrb[0].mxu0 %v2419_v35  ;;  %v2898_v35 = vld [vmem:[%s3290_s6 + $0x8] sm:$0xff]  }
  0x49   :  { %707 = vmatmul.mubr.bf16.vlgmr.msra.gmra.mrb[0].mxu1 %v2421_v38  ;;  %2729 = vmatpush3.bf16.msra.mxu0 %v2843_v42  ;;  %v2418_v38 = vld [vmem:[%s3287_s3] ss:$0 sm:$0xff] }
  0x4a   :  { %2751 = vmatpush3.bf16.msra.mxu1 %v2844_v43  ;;  %2730 = vmatprep.subr.bf16.mxu0 %v2845_v44 }
  0x4b   :  { %2752 = vmatprep.subr.bf16.mxu1 %v2846_v45  ;;  %747 = vmatprep.mubr.bf16.mxu0 %v2424_v11  ;;  %v2902_v11 = vld [vmem:[%s3290_s6 + $0x28] sm:$0xff]  }
  0x4c   :  { %788 = vmatprep.mubr.bf16.mxu1 %v2426_v15  ;;  %v1108_v15 = vld [vmem:[#allocation4 + $0x40] sm:$0xff] }
  0x4d   :  { %2731 = vmatpush3.bf16.msra.mxu0 %v2847_v46 }
  0x4e   :  { %2753 = vmatpush3.bf16.msra.mxu1 %v2848_v47  ;;  %2732 = vmatprep.subr.bf16.mxu0 %v2849_v48 }
  0x4f   :  { %2754 = vmatprep.subr.bf16.mxu1 %v2850_v49 }
  0x51   :  { %2733 = vmatpush3.bf16.msra.mxu0 %v2851_v50 }
  0x52   :  { %2755 = vmatpush3.bf16.msra.mxu1 %v2852_v51  ;;  %2734 = vmatprep.subr.bf16.mxu0 %v2853_v52 }
  0x53   :  { %2756 = vmatprep.subr.bf16.mxu1 %v2854_v53 }
  0x55   :  { %2735 = vmatpush3.bf16.msra.mxu0 %v2855_v54 }
  0x56   :  { %2757 = vmatpush3.bf16.msra.mxu1 %v2856_v55  ;;  %2736 = vmatprep.subr.bf16.mxu0 %v2857_v56 }
  0x57   :  { %2758 = vmatprep.subr.bf16.mxu1 %v2858_v57 }
  0x59   :  { %2737 = vmatpush3.bf16.msra.mxu0 %v2859_v58 }
  0x5a   :  { %2759 = vmatpush3.bf16.msra.mxu1 %v2860_v59  ;;  %2738 = vmatprep.subr.bf16.mxu0 %v2861_v60 }
  0x5b   :  { %2760 = vmatprep.subr.bf16.mxu1 %v2862_v61 }
  0x5d   :  { %2739 = vmatpush3.bf16.msra.mxu0 %v2863_v62 }
  0x5e   :  { %2761 = vmatpush3.bf16.msra.mxu1 %v2864_v63  ;;  %2740 = vmatprep.subr.bf16.mxu0 %v2865_v0 }
  0x5f   :  { %2762 = vmatprep.subr.bf16.mxu1 %v2866_v1 }
  0x61   :  { %2741 = vmatpush3.bf16.msra.mxu0 %v2867_v2 }
  0x62   :  { %2763 = vmatpush3.bf16.msra.mxu1 %v2868_v3  ;;  %2742 = vmatprep.subr.bf16.mxu0 %v2869_v4 }
  0x63   :  { %2764 = vmatprep.subr.bf16.mxu1 %v2870_v5 }
  0x65   :  { %2743 = vmatpush3.bf16.msra.mxu0 %v2871_v6 }
  0x66   :  { %2765 = vmatpush3.bf16.msra.mxu1 %v2872_v7  ;;  %908 = vmatprep.subr.bf16.mxu0 %v2875_v17 }
  0x67   :  { %2781 = vmatprep.subr.bf16.mxu1 %v2963_v34 }
  0x68   :  { %748 = vmatmul.mubr.bf16.vlgmr.msra.gmra.mrb[4].mxu0 %v2423_v10  ;;  %v2901_v10 = vld [vmem:[%s3290_s6 + $0x20] sm:$0xff]  }
  0x69   :  { %789 = vmatmul.mubr.bf16.vlgmr.msra.gmra.mrb[4].mxu1 %v2425_v14  ;;  %909 = vmatpush1.bf16.msra.mxu0 %v2873_v16  ;;  %v1100_v14 = vld [vmem:[#allocation4] sm:$0xff]  ;;  %v3150_v16 = vld [vmem:[#allocation4 + $0x8] sm:$0xff] }
  0x6a   :  { %910 = vmatprep.subr.bf16.mxu0 %v2878_v18  ;;  %940 = vmatprep.mubr.bf16.mxu0 %v2962_v32  ;;  %v2520_v17 = vcombine.low %v1100_v14, %v1108_v15  ;;  %v2521_v18 = vcombine.high %v1100_v14, %v1108_v15 }
  0x6b   :  { %2782 = vmatpush3.bf16.msra.mxu1 %v2897_v33  ;;  %2797 = vmatprep.mubr.msk.bf16.mxu1 %vm2964_vm0, %v2963_v34 }
  0x6c   :  { %2783 = vmatprep.subr.bf16.mxu1 %v2963_v34 }
  0x6d   :  { %911 = vmatpush1.bf16.msra.mxu0 %v2876_v19  ;;  %v3152_v19 = vld [vmem:[#allocation4 + $0x48] sm:$0xff] }
  0x6e   :  { %912 = vmatprep.subr.bf16.mxu0 %v2881_v20  ;;  %v1116_v20 = vld [vmem:[#allocation4 + $0x80] sm:$0xff] }
  0x6f   :  { %2784 = vmatpush3.bf16.msra.mxu1 %v2898_v35  ;;  %v1164_v35 = vld [vmem:[#allocation4 + $0x200] sm:$0xff] }
  0x70   :  { %2785 = vmatprep.subr.bf16.mxu1 %v2963_v34 }
  0x71   :  { %913 = vmatpush1.bf16.msra.mxu0 %v2879_v21  ;;  %v1124_v21 = vld [vmem:[#allocation4 + $0xc0] sm:$0xff] }
  0x72   :  { %914 = vmatprep.subr.bf16.mxu0 %v2884_v22  ;;  %v2522_v22 = vcombine.low %v3150_v16, %v3152_v19 }
  0x73   :  { %2786 = vmatpush3.bf16.msra.mxu1 %v2899_v8 }
  0x74   :  { %2787 = vmatprep.subr.bf16.mxu1 %v2963_v34 }
  0x75   :  { %915 = vmatpush1.bf16.msra.mxu0 %v2882_v23  ;;  %v2523_v23 = vcombine.high %v3150_v16, %v3152_v19  ;;  %v1189_v16 = vld [vmem:[#allocation4 + $0x2c8] sm:$0xff] }
  0x76   :  { %916 = vmatprep.subr.bf16.mxu0 %v2887_v24  ;;  %v2537_v24 = vcombine.high %v1116_v20, %v1124_v21 }
  0x77   :  { %2788 = vmatpush3.bf16.msra.mxu1 %v2900_v9 }
  0x78   :  { %2789 = vmatprep.subr.bf16.mxu1 %v2963_v34 }
  0x79   :  { %917 = vmatpush1.bf16.msra.mxu0 %v2885_v25  ;;  %v2536_v25 = vcombine.low %v1116_v20, %v1124_v21 }
  0x7a   :  { %918 = vmatprep.subr.bf16.mxu0 %v2890_v26  ;;  %v1132_v26 = vld [vmem:[#allocation4 + $0x100] sm:$0xff] }
  0x7b   :  { %2790 = vmatpush3.bf16.msra.mxu1 %v2901_v10 }
  0x7c   :  { %2791 = vmatprep.subr.bf16.mxu1 %v2963_v34 }
  0x7d   :  { %919 = vmatpush1.bf16.msra.mxu0 %v2888_v27  ;;  %v1140_v27 = vld [vmem:[#allocation4 + $0x140] sm:$0xff] }
  0x7e   :  { %920 = vmatprep.subr.bf16.mxu0 %v2893_v28  ;;  %v2553_v28 = vcombine.high %v1132_v26, %v1140_v27 }
  0x7f   :  { %2792 = vmatpush3.bf16.msra.mxu1 %v2902_v11 }
  0x80   :  { %2793 = vmatprep.subr.bf16.mxu1 %v2963_v34 }
  0x81   :  { %921 = vmatpush1.bf16.msra.mxu0 %v2891_v29  ;;  %v2552_v29 = vcombine.low %v1132_v26, %v1140_v27  ;;  %v1181_v27 = vld [vmem:[#allocation4 + $0x288] sm:$0xff] }
  0x82   :  { %922 = vmatprep.subr.bf16.mxu0 %v2896_v30  ;;  %v1148_v30 = vld [vmem:[#allocation4 + $0x180] sm:$0xff] }
  0x83   :  { %2794 = vmatpush3.bf16.msra.mxu1 %v2903_v12  ;;  %v1133_v12 = vld [vmem:[#allocation4 + $0x108] sm:$0xff] }
  0x84   :  { %2795 = vmatprep.subr.bf16.mxu1 %v2963_v34 }
  0x85   :  { %923 = vmatpush1.bf16.msra.mxu0 %v2894_v31  ;;  %v1156_v31 = vld [vmem:[#allocation4 + $0x1c0] sm:$0xff] }
  0x86   :  { %1952 = vmatprep.subr.bf16.mxu0 %v2521_v18  ;;  %v2569_v33 = vcombine.high %v1148_v30, %v1156_v31  ;;  %v2568_v34 = vcombine.low %v1148_v30, %v1156_v31  ;;  %v1157_v18 = vld [vmem:[#allocation4 + $0x1c8] sm:$0xff]  ;;  %v1204_v30 = vld [vmem:[#allocation4 + $0x340] sm:$0xff] }
  0x87   :  { %2796 = vmatpush3.bf16.msra.mxu1 %v2904_v13  ;;  %v1141_v13 = vld [vmem:[#allocation4 + $0x148] sm:$0xff] }
  0x88   :  { %1995 = vmatprep.subr.bf16.mxu1 %v2523_v23  ;;  %v2555_v15 = vcombine.high %v1133_v12, %v1141_v13  ;;  %v2554_v20 = vcombine.low %v1133_v12, %v1141_v13  ;;  %v1165_v23 = vld [vmem:[#allocation4 + $0x208] sm:$0xff]  ;;  %v1143_v12 = vld [vmem:[#allocation4 + $0x158] sm:$0xff] }
  0x89   :  { %v1197_v31 = vld [vmem:[#allocation4 + $0x308] sm:$0xff] }
 0x11b   :  { %v2700_v36 = vpop.f32.mrb[0].mxu0 }
 0x11c   :  { %v2722_v37 = vpop.f32.mrb[0].mxu1  ;;  %v2701_v39 = vpop.f32.mrb[1].mxu0 }
 0x11d   :  { %v2702_v40 = vadd.f32 %v2701_v39, %v2700_v36  ;;  %v2723_v41 = vpop.f32.mrb[1].mxu1  ;;  %v2703_v42 = vpop.f32.mrb[2].mxu0  ;;  %v1172_v36 = vld [vmem:[#allocation4 + $0x240] sm:$0xff] }
 0x11e   :  { %v2724_v43 = vadd.f32 %v2723_v41, %v2722_v37  ;;  %v2725_v44 = vpop.f32.mrb[2].mxu1  ;;  %v2704_v45 = vpop.f32.mrb[3].mxu0  ;;  %v2585_v37 = vcombine.high %v1164_v35, %v1172_v36  ;;  %v1180_v39 = vld [vmem:[#allocation4 + $0x280] sm:$0xff] }
 0x11f   :  { %v668_v46 = vadd.f32 %v2702_v40, %v2418_v38  ;;  %v2705_v47 = vadd.f32 %v2704_v45, %v2703_v42  ;;  %v2726_v48 = vpop.f32.mrb[3].mxu1  ;;  %v1188_v40 = vld [vmem:[#allocation4 + $0x2c0] sm:$0xff] }
 0x120   :  { %v2727_v49 = vadd.f32 %v2726_v48, %v2725_v44  ;;  %v2601_v41 = vcombine.high %v1180_v39, %v1188_v40  ;;  %v2600_v42 = vcombine.low %v1180_v39, %v1188_v40  ;;  %v1220_v39 = vld [vmem:[#allocation4 + $0x3c0] sm:$0xff]  ;;  %v1213_v40 = vld [vmem:[#allocation4 + $0x388] sm:$0xff] }
 0x121   :  { %v709_v50 = vadd.f32 %v2724_v43, %v668_v46  ;;  %v671_v51 = vadd.f32 %v2705_v47, %v2418_v38  ;;  %v2584_v38 = vcombine.low %v1164_v35, %v1172_v36  ;;  %v818_v43 = vlaneseq  ;;  %v816_v46 = vld [vmem:[%s3289_s5] sm:$0x3] }
 0x123   :  { %v712_v52 = vadd.f32 %v2727_v49, %v671_v51  ;;  %v3158_v44 = vshrl.u32 %v818_v43, 7 }
 0x125   :  { %v3161_v45 = vsub.s32 0, %v3158_v44  ;;  %v3167_v47 = vsub.s32 1, %v3158_v44 }
 0x127   :  { %v821_v48 = vrot.slane %v816_v46, %v3161_v45  ;;  %v825_v49 = vrot.slane %v816_v46, %v3167_v47 }
 0x13b   :  { %v2744_v53 = vpop.f32.mrb[4].mxu0 }
 0x13c   :  { %v2766_v54 = vpop.f32.mrb[4].mxu1  ;;  %v2745_v55 = vpop.f32.mrb[5].mxu0 }
 0x13d   :  { %v2746_v56 = vadd.f32 %v2745_v55, %v2744_v53  ;;  %v2767_v57 = vpop.f32.mrb[5].mxu1  ;;  %v2747_v58 = vpop.f32.mrb[6].mxu0 }
 0x13e   :  { %v2768_v59 = vadd.f32 %v2767_v57, %v2766_v54  ;;  %v2769_v60 = vpop.f32.mrb[6].mxu1  ;;  %v2748_v61 = vpop.f32.mrb[7].mxu0 }
 0x13f   :  { %v750_v62 = vadd.f32 %v2746_v56, %v709_v50  ;;  %v2749_v63 = vadd.f32 %v2748_v61, %v2747_v58  ;;  %v2770_v0 = vpop.f32.mrb[7].mxu1 }
 0x140   :  { %v2771_v1 = vadd.f32 %v2770_v0, %v2769_v60  ;;  %v956_v0 = vld [vmem:[%s3285_s1 + $0x8] sm:$0xff] }
 0x141   :  { %v791_v2 = vadd.f32 %v2768_v59, %v750_v62  ;;  %v753_v3 = vadd.f32 %v2749_v63, %v712_v52  ;;  %v955_v62 = vld [vmem:[%s3285_s1] sm:$0xff] }
 0x143   :  { %v794_v4 = vadd.f32 %v2771_v1, %v753_v3  ;;  %v797_v5 = vmax.f32 %v791_v2, 0.0 }
 0x145   :  { %v798_v6 = vmax.f32 %v794_v4, 0.0 }
 0x147   :  { %v799_v7 = vpack.c.bf16 %v798_v6, %v797_v5  ;;  %v1117_v5 = vld [vmem:[#allocation4 + $0x88] sm:$0xff] }
 0x148   :  { %v1125_v6 = vld [vmem:[#allocation4 + $0xc8] sm:$0xff] }
 0x149   :  { %941 = vmatmul.mubr.bf16.vlgmr.msra.gmra.mrb[8].mxu0 %v799_v7  ;;  %v2539_v11 = vcombine.high %v1117_v5, %v1125_v6  ;;  %v2538_v14 = vcombine.low %v1117_v5, %v1125_v6 }
 0x14a   :  { %1984 = vmatprep.mubr.bf16.mxu0 %v2962_v32  ;;  %1953 = vmatpush1.bf16.msra.mxu0 %v2520_v17  ;;  %v1149_v17 = vld [vmem:[#allocation4 + $0x188] sm:$0xff] }
 0x14b   :  { %1954 = vmatprep.subr.bf16.mxu0 %v2537_v24  ;;  %v2571_v21 = vcombine.high %v1149_v17, %v1157_v18  ;;  %v1173_v24 = vld [vmem:[#allocation4 + $0x248] sm:$0xff] }
 0x14c   :  { %v2587_v26 = vcombine.high %v1165_v23, %v1173_v24  ;;  %v2586_v19 = vcombine.low %v1165_v23, %v1173_v24  ;;  %v1159_v23 = vld [vmem:[#allocation4 + $0x1d8] sm:$0xff] }
 0x14e   :  { %1955 = vmatpush1.bf16.msra.mxu0 %v2536_v25  ;;  %v2570_v25 = vcombine.low %v1149_v17, %v1157_v18  ;;  %v1150_v18 = vld [vmem:[#allocation4 + $0x190] sm:$0xff] }
 0x14f   :  { %1956 = vmatprep.subr.bf16.mxu0 %v2553_v28  ;;  %v2602_v28 = vcombine.low %v1181_v27, %v1189_v16 }
 0x152   :  { %1957 = vmatpush1.bf16.msra.mxu0 %v2552_v29  ;;  %v1196_v29 = vld [vmem:[#allocation4 + $0x300] sm:$0xff] }
 0x153   :  { %1958 = vmatprep.subr.bf16.mxu0 %v2569_v33  ;;  %v2617_v33 = vcombine.high %v1196_v29, %v1204_v30  ;;  %v2616_v35 = vcombine.low %v1196_v29, %v1204_v30 }
 0x156   :  { %1959 = vmatpush1.bf16.msra.mxu0 %v2568_v34  ;;  %v1205_v34 = vld [vmem:[#allocation4 + $0x348] sm:$0xff] }
 0x157   :  { %1960 = vmatprep.subr.bf16.mxu0 %v2585_v37  ;;  %v2618_v36 = vcombine.low %v1197_v31, %v1205_v34  ;;  %v2619_v37 = vcombine.high %v1197_v31, %v1205_v34  ;;  %v1182_v34 = vld [vmem:[#allocation4 + $0x290] sm:$0xff] }
 0x15a   :  { %1961 = vmatpush1.bf16.msra.mxu0 %v2584_v38  ;;  %v1212_v38 = vld [vmem:[#allocation4 + $0x380] sm:$0xff] }
 0x15b   :  { %1962 = vmatprep.subr.bf16.mxu0 %v2601_v41  ;;  %v2633_v41 = vcombine.high %v1212_v38, %v1220_v39  ;;  %v2632_v43 = vcombine.low %v1212_v38, %v1220_v39 }
 0x15e   :  { %1963 = vmatpush1.bf16.msra.mxu0 %v2600_v42  ;;  %v1221_v42 = vld [vmem:[#allocation4 + $0x3c8] sm:$0xff] }
 0x15f   :  { %1964 = vmatprep.subr.bf16.mxu0 %v2617_v33  ;;  %v2634_v46 = vcombine.low %v1213_v40, %v1221_v42 }
 0x162   :  { %1965 = vmatpush1.bf16.msra.mxu0 %v2616_v35  ;;  %v1190_v35 = vld [vmem:[#allocation4 + $0x2d0] sm:$0xff] }
 0x163   :  { %1966 = vmatprep.subr.bf16.mxu0 %v2633_v41 }
 0x166   :  { %1967 = vmatpush1.bf16.msra.mxu0 %v2632_v43  ;;  %v1206_v43 = vld [vmem:[#allocation4 + $0x350] sm:$0xff] }
 0x21c   :  { %v942_v50 = vpop.f32.mrb[8].mxu0 }
 0x21d   :  { %v943_v51 = vadd.f32 %v942_v50, %v821_v48  ;;  %v944_v52 = vpop.f32.mrb[9].mxu0  ;;  %v1110_v50 = vld [vmem:[#allocation4 + $0x50] sm:$0xff] }
 0x21e   :  { %v945_v53 = vadd.f32 %v944_v52, %v825_v49  ;;  %v946_v54 = vpop.f32.mrb[10].mxu0 }
 0x21f   :  { %v947_v55 = vadd.f32 %v946_v54, %v821_v48  ;;  %v948_v56 = vpop.f32.mrb[11].mxu0  ;;  %v2635_v48 = vcombine.high %v1213_v40, %v1221_v42  ;;  %v1111_v54 = vld [vmem:[#allocation4 + $0x58] sm:$0xff]  ;;  %v2605_v40 = vcombine.high %v1182_v34, %v1190_v35  ;;  %v1198_v42 = vld [vmem:[#allocation4 + $0x310] sm:$0xff] }
 0x220   :  { %v951_v57 = vmul.f32 1.442695, %v945_v53  ;;  %v2664_v58 = vpack.c.bf16 %v945_v53, %v943_v51  ;;  %v949_v59 = vadd.f32 %v948_v56, %v825_v49  ;;  %v1102_v49 = vld [vmem:[#allocation4 + $0x10] sm:$0xff] }
 0x221   :  { %v2524_v52 = vcombine.low %v1102_v49, %v1110_v50  ;;  %v2525_v53 = vcombine.high %v1102_v49, %v1110_v50  ;;  %v2604_v49 = vcombine.low %v1182_v34, %v1190_v35  ;;  %v1177_v34 = vld [vmem:[#allocation4 + $0x268] sm:$0xff] }
 0x222   :  { %2905 = vpow2.f32 %v951_v57  ;;  %973 = vst [vmem:[%s3294_s10] sm:$0xff] %v2664_v58  ;;  %v953_v60 = vmul.f32 1.442695, %v949_v59  ;;  %v2665_v61 = vpack.c.bf16 %v949_v59, %v947_v55  ;;  %v2511_v57 = vld [vmem:[%s3291_s7] ss:$0 sm:$0xff] }
 0x223   :  { %2038 = vmatprep.subr.bf16.mxu0 %v2525_v53  ;;  %v1214_v53 = vld [vmem:[#allocation4 + $0x390] sm:$0xff] }
 0x224   :  { %2907 = vpow2.f32 %v953_v60  ;;  %974 = vst [vmem:[%s3294_s10 + $0xc] sm:$0xff] %v2665_v61 }
 0x22c   :  { %v2906_v63 = vpop.eup %2905 }
 0x22d   :  { %v957_v1 = vmul.f32 %v2906_v63, %v955_v62 }
 0x22e   :  { %v2908_v2 = vpop.eup %2907 }
 0x22f   :  { %v958_v3 = vmul.f32 %v2908_v2, %v956_v0  ;;  %v959_v4 = vadd.f32 %v957_v1, %v943_v51  ;;  %v1103_v51 = vld [vmem:[#allocation4 + $0x18] sm:$0xff]  ;;  %v1118_v0 = vld [vmem:[#allocation4 + $0x90] sm:$0xff] }
 0x230   :  { %v2527_v56 = vcombine.high %v1103_v51, %v1111_v54  ;;  %v1126_v1 = vld [vmem:[#allocation4 + $0xd0] sm:$0xff]  ;;  %v1119_v2 = vld [vmem:[#allocation4 + $0x98] sm:$0xff] }
 0x231   :  { %v960_v7 = vadd.f32 %v958_v3, %v947_v55  ;;  %v2666_v8 = vpack.c.bf16 %v959_v4, %v959_v4  ;;  %v2526_v55 = vcombine.low %v1103_v51, %v1111_v54  ;;  %v1127_v3 = vld [vmem:[#allocation4 + $0xd8] sm:$0xff]  ;;  %v2540_v13 = vcombine.low %v1118_v0, %v1126_v1  ;;  %v1222_v54 = vld [vmem:[#allocation4 + $0x3d0] sm:$0xff] }
 0x232   :  { %v2621_v51 = vcombine.high %v1198_v42, %v1206_v43 }
 0x233   :  { %v975_v9 = vpack.c.bf16 %v960_v7, %v959_v4  ;;  %v2667_v10 = vpack.c.bf16 %v960_v7, %v960_v7  ;;  %983 = vst [vmem:[%s3294_s10 + $0x8] sm:$0xf] %v2666_v8  ;;  %v2541_v7 = vcombine.high %v1118_v0, %v1126_v1  ;;  %v2543_v8 = vcombine.high %v1119_v2, %v1127_v3  ;;  %v1113_v0 = vld [vmem:[#allocation4 + $0x68] sm:$0xff] }
 0x234   :  { %v2636_v1 = vcombine.low %v1214_v53, %v1222_v54 }
 0x235   :  { %984 = vst [vmem:[%s3294_s10 + $0x14] sm:$0xf] %v2667_v10  ;;  %2798 = vmatmul.mubr.bf16.vlgmr.msra.gmra.mrb[8].mxu1 %v975_v9  ;;  %v1134_v9 = vld [vmem:[#allocation4 + $0x110] sm:$0xff] }
 0x236   :  { %1996 = vmatpush1.bf16.msra.mxu1 %v2522_v22  ;;  %2027 = vmatprep.mubr.bf16.mxu1 %v2962_v32  ;;  %v2603_v22 = vcombine.high %v1181_v27, %v1189_v16  ;;  %v1142_v10 = vld [vmem:[#allocation4 + $0x150] sm:$0xff] }
 0x237   :  { %1997 = vmatprep.subr.bf16.mxu1 %v2539_v11  ;;  %v1135_v11 = vld [vmem:[#allocation4 + $0x118] sm:$0xff]  ;;  %v2556_v24 = vcombine.low %v1134_v9, %v1142_v10  ;;  %v1166_v16 = vld [vmem:[#allocation4 + $0x210] sm:$0xff] }
 0x238   :  { %v2559_v17 = vcombine.high %v1135_v11, %v1143_v12 }
 0x23a   :  { %1998 = vmatpush1.bf16.msra.mxu1 %v2538_v14  ;;  %v2542_v14 = vcombine.low %v1119_v2, %v1127_v3 }
 0x23b   :  { %1999 = vmatprep.subr.bf16.mxu1 %v2555_v15  ;;  %v2557_v15 = vcombine.high %v1134_v9, %v1142_v10  ;;  %v1129_v9 = vld [vmem:[#allocation4 + $0xe8] sm:$0xff] }
 0x23e   :  { %2000 = vmatpush1.bf16.msra.mxu1 %v2554_v20  ;;  %v1158_v20 = vld [vmem:[#allocation4 + $0x1d0] sm:$0xff] }
 0x23f   :  { %2001 = vmatprep.subr.bf16.mxu1 %v2571_v21  ;;  %v1151_v21 = vld [vmem:[#allocation4 + $0x198] sm:$0xff]  ;;  %v2572_v29 = vcombine.low %v1150_v18, %v1158_v20 }
 0x240   :  { %v2575_v27 = vcombine.high %v1151_v21, %v1159_v23  ;;  %v2574_v30 = vcombine.low %v1151_v21, %v1159_v23 }
 0x242   :  { %2002 = vmatpush1.bf16.msra.mxu1 %v2570_v25  ;;  %v2558_v25 = vcombine.low %v1135_v11, %v1143_v12 }
 0x243   :  { %2003 = vmatprep.subr.bf16.mxu1 %v2587_v26  ;;  %v2573_v26 = vcombine.high %v1150_v18, %v1158_v20  ;;  %v1145_v18 = vld [vmem:[#allocation4 + $0x168] sm:$0xff] }
 0x246   :  { %2004 = vmatpush1.bf16.msra.mxu1 %v2586_v19  ;;  %v1174_v19 = vld [vmem:[#allocation4 + $0x250] sm:$0xff] }
 0x247   :  { %2005 = vmatprep.subr.bf16.mxu1 %v2603_v22  ;;  %v1167_v22 = vld [vmem:[#allocation4 + $0x218] sm:$0xff]  ;;  %v2589_v31 = vcombine.high %v1166_v16, %v1174_v19  ;;  %v2588_v38 = vcombine.low %v1166_v16, %v1174_v19  ;;  %v1161_v16 = vld [vmem:[#allocation4 + $0x1e8] sm:$0xff] }
 0x24a   :  { %2006 = vmatpush1.bf16.msra.mxu1 %v2602_v28  ;;  %v1175_v28 = vld [vmem:[#allocation4 + $0x258] sm:$0xff] }
 0x24b   :  { %2007 = vmatprep.subr.bf16.mxu1 %v2619_v37  ;;  %v2591_v33 = vcombine.high %v1167_v22, %v1175_v28  ;;  %v1191_v37 = vld [vmem:[#allocation4 + $0x2d8] sm:$0xff]  ;;  %v2590_v39 = vcombine.low %v1167_v22, %v1175_v28 }
 0x24e   :  { %2008 = vmatpush1.bf16.msra.mxu1 %v2618_v36  ;;  %v1183_v36 = vld [vmem:[#allocation4 + $0x298] sm:$0xff] }
 0x24f   :  { %2009 = vmatprep.subr.bf16.mxu1 %v2635_v48  ;;  %v2607_v41 = vcombine.high %v1183_v36, %v1191_v37  ;;  %v1207_v48 = vld [vmem:[#allocation4 + $0x358] sm:$0xff]  ;;  %v2606_v50 = vcombine.low %v1183_v36, %v1191_v37 }
 0x252   :  { %2010 = vmatpush1.bf16.msra.mxu1 %v2634_v46  ;;  %v1199_v46 = vld [vmem:[#allocation4 + $0x318] sm:$0xff] }
 0x253   :  { %2081 = vmatprep.subr.bf16.mxu1 %v2527_v56  ;;  %v1223_v56 = vld [vmem:[#allocation4 + $0x3d8] sm:$0xff] }
 0x308   :  { %v1090_v58 = vpop.f32.mrb[8].mxu1 }
 0x309   :  { %v1091_v59 = vadd.f32 %v2511_v57, %v1090_v58  ;;  %v2799_v60 = vpop.f32.mrb[9].mxu1  ;;  %v2622_v58 = vcombine.low %v1199_v46, %v1207_v48 }
 0x30a   :  { %v1093_v61 = vpop.f32.mrb[10].mxu1 }
 0x30b   :  { %v1094_v62 = vadd.f32 %v2511_v57, %v1093_v61  ;;  %v2800_v63 = vpop.f32.mrb[11].mxu1  ;;  %v1097_v4 = vmax.f32 %v1091_v59, 0.0  ;;  %v2620_v57 = vcombine.low %v1198_v42, %v1206_v43  ;;  %v2637_v59 = vcombine.high %v1214_v53, %v1222_v54  ;;  %v1104_v61 = vld [vmem:[#allocation4 + $0x20] sm:$0xff]  ;;  %v1193_v42 = vld [vmem:[#allocation4 + $0x2e8] sm:$0xff] }
 0x30c   :  { %v1105_v63 = vld [vmem:[#allocation4 + $0x28] sm:$0xff] }
 0x30d   :  { %v1098_v5 = vmax.f32 %v1094_v62, 0.0  ;;  %v1112_v62 = vld [vmem:[#allocation4 + $0x60] sm:$0xff]  ;;  %v2530_v11 = vcombine.low %v1105_v63, %v1113_v0  ;;  %v1209_v53 = vld [vmem:[#allocation4 + $0x368] sm:$0xff] }
 0x30e   :  { %v2529_v3 = vcombine.high %v1104_v61, %v1112_v62  ;;  %v2528_v10 = vcombine.low %v1104_v61, %v1112_v62  ;;  %v1225_v61 = vld [vmem:[#allocation4 + $0x3e8] sm:$0xff] }
 0x30f   :  { %v3196_v6 = vpack.c.bf16 %v1098_v5, %v1097_v4  ;;  %v2531_v4 = vcombine.high %v1105_v63, %v1113_v0  ;;  %v1120_v5 = vld [vmem:[#allocation4 + $0xa0] sm:$0xff] }
 0x311   :  { %1985 = vmatmul.mubr.bf16.vlgmr.msra.gmra.mrb[12].mxu0 %v3196_v6  ;;  %2028 = vmatmul.mubr.bf16.vlgmr.msra.gmra.mrb[12].mxu1 %v3196_v6 }
 0x312   :  { %2039 = vmatpush1.bf16.msra.mxu0 %v2524_v52  ;;  %2082 = vmatpush1.bf16.msra.mxu1 %v2526_v55  ;;  %v2623_v52 = vcombine.high %v1199_v46, %v1207_v48  ;;  %v1215_v55 = vld [vmem:[#allocation4 + $0x398] sm:$0xff] }
 0x313   :  { %2040 = vmatprep.subr.bf16.mxu0 %v2541_v7  ;;  %2083 = vmatprep.subr.bf16.mxu1 %v2543_v8  ;;  %v2639_v60 = vcombine.high %v1215_v55, %v1223_v56  ;;  %v2638_v2 = vcombine.low %v1215_v55, %v1223_v56  ;;  %v1128_v7 = vld [vmem:[#allocation4 + $0xe0] sm:$0xff]  ;;  %v1121_v8 = vld [vmem:[#allocation4 + $0xa8] sm:$0xff] }
 0x314   :  { %2070 = vmatprep.mubr.bf16.mxu0 %v2962_v32  ;;  %2113 = vmatprep.mubr.bf16.mxu1 %v2962_v32  ;;  %v2545_v12 = vcombine.high %v1120_v5, %v1128_v7  ;;  %v2544_v20 = vcombine.low %v1120_v5, %v1128_v7  ;;  %v2546_v21 = vcombine.low %v1121_v8, %v1129_v9  ;;  %v1115_v5 = vld [vmem:[#allocation4 + $0x78] sm:$0xff] }
 0x316   :  { %2041 = vmatpush1.bf16.msra.mxu0 %v2540_v13  ;;  %2084 = vmatpush1.bf16.msra.mxu1 %v2542_v14  ;;  %v2547_v13 = vcombine.high %v1121_v8, %v1129_v9  ;;  %v1136_v14 = vld [vmem:[#allocation4 + $0x120] sm:$0xff] }
 0x317   :  { %2042 = vmatprep.subr.bf16.mxu0 %v2557_v15  ;;  %2085 = vmatprep.subr.bf16.mxu1 %v2559_v17  ;;  %v1144_v15 = vld [vmem:[#allocation4 + $0x160] sm:$0xff]  ;;  %v1137_v17 = vld [vmem:[#allocation4 + $0x128] sm:$0xff] }
 0x318   :  { %v2561_v23 = vcombine.high %v1136_v14, %v1144_v15  ;;  %v2560_v19 = vcombine.low %v1136_v14, %v1144_v15  ;;  %v2562_v22 = vcombine.low %v1137_v17, %v1145_v18  ;;  %v1131_v14 = vld [vmem:[#allocation4 + $0xf8] sm:$0xff] }
 0x31a   :  { %2043 = vmatpush1.bf16.msra.mxu0 %v2556_v24  ;;  %2086 = vmatpush1.bf16.msra.mxu1 %v2558_v25  ;;  %v2563_v24 = vcombine.high %v1137_v17, %v1145_v18  ;;  %v1152_v25 = vld [vmem:[#allocation4 + $0x1a0] sm:$0xff] }
 0x31b   :  { %2044 = vmatprep.subr.bf16.mxu0 %v2573_v26  ;;  %2087 = vmatprep.subr.bf16.mxu1 %v2575_v27  ;;  %v1160_v26 = vld [vmem:[#allocation4 + $0x1e0] sm:$0xff]  ;;  %v1153_v27 = vld [vmem:[#allocation4 + $0x1a8] sm:$0xff] }
 0x31c   :  { %v2577_v28 = vcombine.high %v1152_v25, %v1160_v26  ;;  %v2576_v35 = vcombine.low %v1152_v25, %v1160_v26  ;;  %v2578_v36 = vcombine.low %v1153_v27, %v1161_v16  ;;  %v1147_v25 = vld [vmem:[#allocation4 + $0x178] sm:$0xff] }
 0x31e   :  { %2045 = vmatpush1.bf16.msra.mxu0 %v2572_v29  ;;  %2088 = vmatpush1.bf16.msra.mxu1 %v2574_v30  ;;  %v2579_v29 = vcombine.high %v1153_v27, %v1161_v16  ;;  %v1168_v30 = vld [vmem:[#allocation4 + $0x220] sm:$0xff] }
 0x31f   :  { %2046 = vmatprep.subr.bf16.mxu0 %v2589_v31  ;;  %2089 = vmatprep.subr.bf16.mxu1 %v2591_v33  ;;  %v1176_v31 = vld [vmem:[#allocation4 + $0x260] sm:$0xff]  ;;  %v1169_v33 = vld [vmem:[#allocation4 + $0x228] sm:$0xff] }
 0x320   :  { %v2593_v37 = vcombine.high %v1168_v30, %v1176_v31  ;;  %v2592_v43 = vcombine.low %v1168_v30, %v1176_v31  ;;  %v2594_v46 = vcombine.low %v1169_v33, %v1177_v34  ;;  %v1163_v30 = vld [vmem:[#allocation4 + $0x1f8] sm:$0xff] }
 0x322   :  { %2047 = vmatpush1.bf16.msra.mxu0 %v2588_v38  ;;  %2090 = vmatpush1.bf16.msra.mxu1 %v2590_v39  ;;  %v2595_v38 = vcombine.high %v1169_v33, %v1177_v34  ;;  %v1184_v39 = vld [vmem:[#allocation4 + $0x2a0] sm:$0xff] }
 0x323   :  { %2048 = vmatprep.subr.bf16.mxu0 %v2605_v40  ;;  %2091 = vmatprep.subr.bf16.mxu1 %v2607_v41  ;;  %v1192_v40 = vld [vmem:[#allocation4 + $0x2e0] sm:$0xff]  ;;  %v1185_v41 = vld [vmem:[#allocation4 + $0x2a8] sm:$0xff] }
 0x324   :  { %v2609_v48 = vcombine.high %v1184_v39, %v1192_v40  ;;  %v2608_v54 = vcombine.low %v1184_v39, %v1192_v40  ;;  %v2610_v55 = vcombine.low %v1185_v41, %v1193_v42  ;;  %v1179_v39 = vld [vmem:[#allocation4 + $0x278] sm:$0xff] }
 0x326   :  { %2049 = vmatpush1.bf16.msra.mxu0 %v2604_v49  ;;  %2092 = vmatpush1.bf16.msra.mxu1 %v2606_v50  ;;  %v2611_v49 = vcombine.high %v1185_v41, %v1193_v42  ;;  %v1200_v50 = vld [vmem:[#allocation4 + $0x320] sm:$0xff] }
 0x327   :  { %2050 = vmatprep.subr.bf16.mxu0 %v2621_v51  ;;  %2093 = vmatprep.subr.bf16.mxu1 %v2623_v52  ;;  %v1208_v51 = vld [vmem:[#allocation4 + $0x360] sm:$0xff]  ;;  %v1201_v52 = vld [vmem:[#allocation4 + $0x328] sm:$0xff] }
 0x328   :  { %v2625_v56 = vcombine.high %v1200_v50, %v1208_v51  ;;  %v2624_v62 = vcombine.low %v1200_v50, %v1208_v51  ;;  %v2626_v63 = vcombine.low %v1201_v52, %v1209_v53 }
 0x32a   :  { %2051 = vmatpush1.bf16.msra.mxu0 %v2620_v57  ;;  %2094 = vmatpush1.bf16.msra.mxu1 %v2622_v58  ;;  %v2627_v57 = vcombine.high %v1201_v52, %v1209_v53  ;;  %v1216_v58 = vld [vmem:[#allocation4 + $0x3a0] sm:$0xff] }
 0x32b   :  { %2052 = vmatprep.subr.bf16.mxu0 %v2637_v59  ;;  %2095 = vmatprep.subr.bf16.mxu1 %v2639_v60  ;;  %v1224_v59 = vld [vmem:[#allocation4 + $0x3e0] sm:$0xff]  ;;  %v1217_v60 = vld [vmem:[#allocation4 + $0x3a8] sm:$0xff] }
 0x32c   :  { %v2641_v0 = vcombine.high %v1216_v58, %v1224_v59  ;;  %v2640_v7 = vcombine.low %v1216_v58, %v1224_v59  ;;  %v2642_v8 = vcombine.low %v1217_v60, %v1225_v61 }
 0x32e   :  { %2053 = vmatpush1.bf16.msra.mxu0 %v2636_v1  ;;  %2096 = vmatpush1.bf16.msra.mxu1 %v2638_v2  ;;  %v2643_v1 = vcombine.high %v1217_v60, %v1225_v61  ;;  %v1106_v2 = vld [vmem:[#allocation4 + $0x30] sm:$0xff] }
 0x32f   :  { %2124 = vmatprep.subr.bf16.mxu0 %v2529_v3  ;;  %2167 = vmatprep.subr.bf16.mxu1 %v2531_v4  ;;  %v1114_v3 = vld [vmem:[#allocation4 + $0x70] sm:$0xff]  ;;  %v1107_v4 = vld [vmem:[#allocation4 + $0x38] sm:$0xff] }
 0x330   :  { %v2533_v9 = vcombine.high %v1106_v2, %v1114_v3  ;;  %v2532_v15 = vcombine.low %v1106_v2, %v1114_v3  ;;  %v2534_v17 = vcombine.low %v1107_v4, %v1115_v5 }
 0x331   :  { %2071 = vmatmul.mubr.bf16.vlgmr.msra.gmra.mrb[16].mxu0 %v3196_v6  ;;  %2114 = vmatmul.mubr.bf16.vlgmr.msra.gmra.mrb[16].mxu1 %v3196_v6 }
 0x332   :  { %2125 = vmatpush1.bf16.msra.mxu0 %v2528_v10  ;;  %2168 = vmatpush1.bf16.msra.mxu1 %v2530_v11  ;;  %v2535_v10 = vcombine.high %v1107_v4, %v1115_v5  ;;  %v1122_v11 = vld [vmem:[#allocation4 + $0xb0] sm:$0xff] }
 0x333   :  { %2126 = vmatprep.subr.bf16.mxu0 %v2545_v12  ;;  %2169 = vmatprep.subr.bf16.mxu1 %v2547_v13  ;;  %v1130_v12 = vld [vmem:[#allocation4 + $0xf0] sm:$0xff]  ;;  %v1123_v13 = vld [vmem:[#allocation4 + $0xb8] sm:$0xff] }
 0x334   :  { %2156 = vmatprep.mubr.bf16.mxu0 %v2962_v32  ;;  %2199 = vmatprep.mubr.bf16.mxu1 %v2962_v32  ;;  %v2549_v18 = vcombine.high %v1122_v11, %v1130_v12  ;;  %v2548_v26 = vcombine.low %v1122_v11, %v1130_v12  ;;  %v2550_v27 = vcombine.low %v1123_v13, %v1131_v14  ;;  %v1246_v11 = vsub.s32 3, %v3158_v44 }
 0x336   :  { %2127 = vmatpush1.bf16.msra.mxu0 %v2544_v20  ;;  %2170 = vmatpush1.bf16.msra.mxu1 %v2546_v21  ;;  %v2551_v20 = vcombine.high %v1123_v13, %v1131_v14  ;;  %v1138_v21 = vld [vmem:[#allocation4 + $0x130] sm:$0xff] }
 0x337   :  { %2128 = vmatprep.subr.bf16.mxu0 %v2561_v23  ;;  %2171 = vmatprep.subr.bf16.mxu1 %v2563_v24  ;;  %v1146_v23 = vld [vmem:[#allocation4 + $0x170] sm:$0xff]  ;;  %v1139_v24 = vld [vmem:[#allocation4 + $0x138] sm:$0xff] }
 0x338   :  { %v2565_v16 = vcombine.high %v1138_v21, %v1146_v23  ;;  %v2564_v31 = vcombine.low %v1138_v21, %v1146_v23  ;;  %v2566_v33 = vcombine.low %v1139_v24, %v1147_v25 }
 0x33a   :  { %2129 = vmatpush1.bf16.msra.mxu0 %v2560_v19  ;;  %2172 = vmatpush1.bf16.msra.mxu1 %v2562_v22  ;;  %v2567_v19 = vcombine.high %v1139_v24, %v1147_v25  ;;  %v1154_v22 = vld [vmem:[#allocation4 + $0x1b0] sm:$0xff] }
 0x33b   :  { %2130 = vmatprep.subr.bf16.mxu0 %v2577_v28  ;;  %2173 = vmatprep.subr.bf16.mxu1 %v2579_v29  ;;  %v1162_v28 = vld [vmem:[#allocation4 + $0x1f0] sm:$0xff]  ;;  %v1155_v29 = vld [vmem:[#allocation4 + $0x1b8] sm:$0xff] }
 0x33c   :  { %v2581_v34 = vcombine.high %v1154_v22, %v1162_v28  ;;  %v2580_v40 = vcombine.low %v1154_v22, %v1162_v28  ;;  %v2582_v41 = vcombine.low %v1155_v29, %v1163_v30 }
 0x33e   :  { %2131 = vmatpush1.bf16.msra.mxu0 %v2576_v35  ;;  %2174 = vmatpush1.bf16.msra.mxu1 %v2578_v36  ;;  %v2583_v35 = vcombine.high %v1155_v29, %v1163_v30  ;;  %v1170_v36 = vld [vmem:[#allocation4 + $0x230] sm:$0xff] }
 0x33f   :  { %2132 = vmatprep.subr.bf16.mxu0 %v2593_v37  ;;  %2175 = vmatprep.subr.bf16.mxu1 %v2595_v38  ;;  %v1178_v37 = vld [vmem:[#allocation4 + $0x270] sm:$0xff]  ;;  %v1171_v38 = vld [vmem:[#allocation4 + $0x238] sm:$0xff] }
 0x340   :  { %v2597_v42 = vcombine.high %v1170_v36, %v1178_v37  ;;  %v2596_v50 = vcombine.low %v1170_v36, %v1178_v37  ;;  %v2598_v51 = vcombine.low %v1171_v38, %v1179_v39  ;;  %v1250_v36 = vsub.s32 4, %v3158_v44 }
 0x341   :  { %v1258_v37 = vsub.s32 6, %v3158_v44 }
 0x342   :  { %2133 = vmatpush1.bf16.msra.mxu0 %v2592_v43  ;;  %2176 = vmatpush1.bf16.msra.mxu1 %v2594_v46  ;;  %v1186_v43 = vld [vmem:[#allocation4 + $0x2b0] sm:$0xff] }
 0x343   :  { %2134 = vmatprep.subr.bf16.mxu0 %v2609_v48  ;;  %2177 = vmatprep.subr.bf16.mxu1 %v2611_v49  ;;  %v1194_v46 = vld [vmem:[#allocation4 + $0x2f0] sm:$0xff]  ;;  %v1187_v48 = vld [vmem:[#allocation4 + $0x2b8] sm:$0xff] }
 0x344   :  { %v1195_v49 = vld [vmem:[#allocation4 + $0x2f8] sm:$0xff]  ;;  %v2613_v52 = vcombine.high %v1186_v43, %v1194_v46  ;;  %v2612_v58 = vcombine.low %v1186_v43, %v1194_v46 }
 0x345   :  { %v2615_v53 = vcombine.high %v1187_v48, %v1195_v49  ;;  %v2614_v59 = vcombine.low %v1187_v48, %v1195_v49 }
 0x346   :  { %2135 = vmatpush1.bf16.msra.mxu0 %v2608_v54  ;;  %2178 = vmatpush1.bf16.msra.mxu1 %v2610_v55  ;;  %v1202_v54 = vld [vmem:[#allocation4 + $0x330] sm:$0xff] }
 0x347   :  { %2136 = vmatprep.subr.bf16.mxu0 %v2625_v56  ;;  %2179 = vmatprep.subr.bf16.mxu1 %v2627_v57  ;;  %v1210_v55 = vld [vmem:[#allocation4 + $0x370] sm:$0xff]  ;;  %v1203_v56 = vld [vmem:[#allocation4 + $0x338] sm:$0xff] }
 0x348   :  { %v1211_v57 = vld [vmem:[#allocation4 + $0x378] sm:$0xff]  ;;  %v2629_v60 = vcombine.high %v1202_v54, %v1210_v55  ;;  %v2628_v2 = vcombine.low %v1202_v54, %v1210_v55 }
 0x349   :  { %v2631_v61 = vcombine.high %v1203_v56, %v1211_v57  ;;  %v2630_v3 = vcombine.low %v1203_v56, %v1211_v57 }
 0x34a   :  { %2137 = vmatpush1.bf16.msra.mxu0 %v2624_v62  ;;  %2180 = vmatpush1.bf16.msra.mxu1 %v2626_v63  ;;  %v1218_v62 = vld [vmem:[#allocation4 + $0x3b0] sm:$0xff] }
 0x34b   :  { %2138 = vmatprep.subr.bf16.mxu0 %v2641_v0  ;;  %2181 = vmatprep.subr.bf16.mxu1 %v2643_v1  ;;  %v1226_v63 = vld [vmem:[#allocation4 + $0x3f0] sm:$0xff]  ;;  %v1219_v0 = vld [vmem:[#allocation4 + $0x3b8] sm:$0xff] }
 0x34c   :  { %v1227_v1 = vld [vmem:[#allocation4 + $0x3f8] sm:$0xff]  ;;  %v2645_v4 = vcombine.high %v1218_v62, %v1226_v63 }
 0x34d   :  { %v2647_v5 = vcombine.high %v1219_v0, %v1227_v1 }
 0x34e   :  { %2139 = vmatpush1.bf16.msra.mxu0 %v2640_v7  ;;  %2182 = vmatpush1.bf16.msra.mxu1 %v2642_v8  ;;  %v2644_v7 = vcombine.low %v1218_v62, %v1226_v63  ;;  %v2646_v8 = vcombine.low %v1219_v0, %v1227_v1 }
 0x34f   :  { %2210 = vmatprep.subr.bf16.mxu0 %v2533_v9  ;;  %2253 = vmatprep.subr.bf16.mxu1 %v2535_v10  ;;  %v1242_v9 = vsub.s32 2, %v3158_v44  ;;  %v1228_v10 = vld [vmem:[%s3293_s9] sm:$0xff] }
 0x350   :  { %v1235_v12 = vrot.slane %v1228_v10, %v3161_v45  ;;  %v1239_v14 = vrot.slane %v1228_v10, %v3167_v47 }
 0x351   :  { %2157 = vmatmul.mubr.bf16.vlgmr.msra.gmra.mrb[20].mxu0 %v3196_v6  ;;  %2200 = vmatmul.mubr.bf16.vlgmr.msra.gmra.mrb[20].mxu1 %v3196_v6  ;;  %v1243_v13 = vrot.slane %v1228_v10, %v1242_v9 }
 0x352   :  { %2211 = vmatpush1.bf16.msra.mxu0 %v2532_v15  ;;  %2254 = vmatpush1.bf16.msra.mxu1 %v2534_v17  ;;  %v1247_v15 = vrot.slane %v1228_v10, %v1246_v11 }
 0x353   :  { %2212 = vmatprep.subr.bf16.mxu0 %v2549_v18  ;;  %2255 = vmatprep.subr.bf16.mxu1 %v2551_v20 }
 0x354   :  { %2242 = vmatprep.mubr.bf16.mxu0 %v2962_v32  ;;  %2285 = vmatprep.mubr.bf16.mxu1 %v2962_v32  ;;  %v2599_v32 = vcombine.high %v1171_v38, %v1179_v39  ;;  %v1254_v38 = vsub.s32 5, %v3158_v44  ;;  %v1262_v39 = vsub.s32 7, %v3158_v44 }
 0x356   :  { %2213 = vmatpush1.bf16.msra.mxu0 %v2548_v26  ;;  %2256 = vmatpush1.bf16.msra.mxu1 %v2550_v27 }
 0x357   :  { %2214 = vmatprep.subr.bf16.mxu0 %v2565_v16  ;;  %2257 = vmatprep.subr.bf16.mxu1 %v2567_v19 }
 0x35a   :  { %2215 = vmatpush1.bf16.msra.mxu0 %v2564_v31  ;;  %2258 = vmatpush1.bf16.msra.mxu1 %v2566_v33 }
 0x35b   :  { %2216 = vmatprep.subr.bf16.mxu0 %v2581_v34  ;;  %2259 = vmatprep.subr.bf16.mxu1 %v2583_v35 }
 0x35e   :  { %2217 = vmatpush1.bf16.msra.mxu0 %v2580_v40  ;;  %2260 = vmatpush1.bf16.msra.mxu1 %v2582_v41  ;;  %v1251_v40 = vrot.slane %v1228_v10, %v1250_v36  ;;  %v1259_v41 = vrot.slane %v1228_v10, %v1258_v37 }
 0x35f   :  { %2218 = vmatprep.subr.bf16.mxu0 %v2597_v42  ;;  %2261 = vmatprep.subr.bf16.mxu1 %v2599_v32  ;;  %v1255_v42 = vrot.slane %v1228_v10, %v1254_v38  ;;  %v1263_v32 = vrot.slane %v1228_v10, %v1262_v39 }
 0x362   :  { %2219 = vmatpush1.bf16.msra.mxu0 %v2596_v50  ;;  %2262 = vmatpush1.bf16.msra.mxu1 %v2598_v51 }
 0x363   :  { %2220 = vmatprep.subr.bf16.mxu0 %v2613_v52  ;;  %2263 = vmatprep.subr.bf16.mxu1 %v2615_v53 }
 0x366   :  { %2221 = vmatpush1.bf16.msra.mxu0 %v2612_v58  ;;  %2264 = vmatpush1.bf16.msra.mxu1 %v2614_v59 }
 0x367   :  { %2222 = vmatprep.subr.bf16.mxu0 %v2629_v60  ;;  %2265 = vmatprep.subr.bf16.mxu1 %v2631_v61 }
 0x36a   :  { %2223 = vmatpush1.bf16.msra.mxu0 %v2628_v2  ;;  %2266 = vmatpush1.bf16.msra.mxu1 %v2630_v3  ;;  %v1229_v2 = vld [vmem:[%s3293_s9 + $0x8] sm:$0xff] }
 0x36b   :  { %2224 = vmatprep.subr.bf16.mxu0 %v2645_v4  ;;  %2267 = vmatprep.subr.bf16.mxu1 %v2647_v5  ;;  %v1267_v3 = vrot.slane %v1229_v2, %v3161_v45  ;;  %v1275_v4 = vrot.slane %v1229_v2, %v1242_v9  ;;  %v1271_v5 = vrot.slane %v1229_v2, %v3167_v47 }
 0x36e   :  { %2225 = vmatpush1.bf16.msra.mxu0 %v2644_v7  ;;  %2268 = vmatpush1.bf16.msra.mxu1 %v2646_v8  ;;  %v1279_v7 = vrot.slane %v1229_v2, %v1246_v11 }
 0x371   :  { %2243 = vmatmul.mubr.bf16.vlgmr.msra.gmra.mrb[24].mxu0 %v3196_v6  ;;  %2286 = vmatmul.mubr.bf16.vlgmr.msra.gmra.mrb[24].mxu1 %v3196_v6 }
 0x3e4   :  { %v1986_v17 = vpop.f32.mrb[12].mxu0  ;;  %v2029_v6 = vpop.f32.mrb[12].mxu1 }
 0x3e5   :  { %v1987_v18 = vadd.f32 %v1986_v17, %v1235_v12  ;;  %v2030_v20 = vadd.f32 %v2029_v6, %v1243_v13  ;;  %v1988_v21 = vpop.f32.mrb[13].mxu0  ;;  %v2031_v23 = vpop.f32.mrb[13].mxu1 }
 0x3e6   :  { %v1989_v24 = vadd.f32 %v1988_v21, %v1239_v14  ;;  %v2032_v25 = vadd.f32 %v2031_v23, %v1247_v15  ;;  %v1990_v26 = vpop.f32.mrb[14].mxu0  ;;  %v2033_v27 = vpop.f32.mrb[14].mxu1 }
 0x3e7   :  { %v1991_v16 = vadd.f32 %v1990_v26, %v1235_v12  ;;  %v2034_v19 = vadd.f32 %v2033_v27, %v1243_v13  ;;  %v1992_v22 = vpop.f32.mrb[15].mxu0  ;;  %v2035_v28 = vpop.f32.mrb[15].mxu1  ;;  %v1283_v27 = vrot.slane %v1229_v2, %v1250_v36 }
 0x3e8   :  { %v2668_v29 = vpack.c.bf16 %v1989_v24, %v1987_v18  ;;  %v2669_v30 = vpack.c.bf16 %v2032_v25, %v2030_v20  ;;  %v1993_v31 = vadd.f32 %v1992_v22, %v1239_v14  ;;  %v2036_v33 = vadd.f32 %v2035_v28, %v1247_v15 }
 0x3e9   :  { %v1295_v22 = vrot.slane %v1229_v2, %v1262_v39 }
 0x3ea   :  { %2392 = vst [vmem:[%s3295_s11] sm:$0xff] %v2668_v29  ;;  %2393 = vst [vmem:[%s3295_s11 + $0x8] sm:$0xff] %v2669_v30  ;;  %v2676_v34 = vpack.c.bf16 %v1993_v31, %v1991_v16  ;;  %v2677_v35 = vpack.c.bf16 %v2036_v33, %v2034_v19  ;;  %v1291_v16 = vrot.slane %v1229_v2, %v1258_v37 }
 0x3eb   :  { %v1287_v19 = vrot.slane %v1229_v2, %v1254_v38 }
 0x3ec   :  { %2400 = vst [vmem:[%s3295_s11 + $0x40] sm:$0xff] %v2676_v34  ;;  %2401 = vst [vmem:[%s3295_s11 + $0x48] sm:$0xff] %v2677_v35 }
 0x404   :  { %v2072_v43 = vpop.f32.mrb[16].mxu0  ;;  %v2115_v46 = vpop.f32.mrb[16].mxu1 }
 0x405   :  { %v2073_v48 = vadd.f32 %v2072_v43, %v1251_v40  ;;  %v2116_v49 = vadd.f32 %v2115_v46, %v1259_v41  ;;  %v2074_v50 = vpop.f32.mrb[17].mxu0  ;;  %v2117_v51 = vpop.f32.mrb[17].mxu1 }
 0x406   :  { %v2075_v52 = vadd.f32 %v2074_v50, %v1255_v42  ;;  %v2118_v53 = vadd.f32 %v2117_v51, %v1263_v32  ;;  %v2076_v54 = vpop.f32.mrb[18].mxu0  ;;  %v2119_v55 = vpop.f32.mrb[18].mxu1 }
 0x407   :  { %v2077_v56 = vadd.f32 %v2076_v54, %v1251_v40  ;;  %v2120_v57 = vadd.f32 %v2119_v55, %v1259_v41  ;;  %v2078_v58 = vpop.f32.mrb[19].mxu0  ;;  %v2121_v59 = vpop.f32.mrb[19].mxu1 }
 0x408   :  { %v2670_v60 = vpack.c.bf16 %v2075_v52, %v2073_v48  ;;  %v2671_v61 = vpack.c.bf16 %v2118_v53, %v2116_v49  ;;  %v2079_v62 = vadd.f32 %v2078_v58, %v1255_v42  ;;  %v2122_v63 = vadd.f32 %v2121_v59, %v1263_v32 }
 0x40a   :  { %2394 = vst [vmem:[%s3295_s11 + $0x10] sm:$0xff] %v2670_v60  ;;  %2395 = vst [vmem:[%s3295_s11 + $0x18] sm:$0xff] %v2671_v61  ;;  %v2678_v0 = vpack.c.bf16 %v2079_v62, %v2077_v56  ;;  %v2679_v1 = vpack.c.bf16 %v2122_v63, %v2120_v57 }
 0x40c   :  { %2402 = vst [vmem:[%s3295_s11 + $0x50] sm:$0xff] %v2678_v0  ;;  %2403 = vst [vmem:[%s3295_s11 + $0x58] sm:$0xff] %v2679_v1 }
 0x424   :  { %v2158_v8 = vpop.f32.mrb[20].mxu0  ;;  %v2201_v10 = vpop.f32.mrb[20].mxu1 }
 0x425   :  { %v2159_v12 = vadd.f32 %v2158_v8, %v1267_v3  ;;  %v2202_v13 = vadd.f32 %v2201_v10, %v1275_v4  ;;  %v2160_v14 = vpop.f32.mrb[21].mxu0  ;;  %v2203_v15 = vpop.f32.mrb[21].mxu1 }
 0x426   :  { %v2161_v17 = vadd.f32 %v2160_v14, %v1271_v5  ;;  %v2204_v6 = vadd.f32 %v2203_v15, %v1279_v7  ;;  %v2162_v18 = vpop.f32.mrb[22].mxu0  ;;  %v2205_v20 = vpop.f32.mrb[22].mxu1 }
 0x427   :  { %v2163_v21 = vadd.f32 %v2162_v18, %v1267_v3  ;;  %v2206_v45 = vadd.f32 %v2205_v20, %v1275_v4  ;;  %v2164_v23 = vpop.f32.mrb[23].mxu0  ;;  %v2207_v24 = vpop.f32.mrb[23].mxu1 }
 0x428   :  { %v2672_v9 = vpack.c.bf16 %v2161_v17, %v2159_v12  ;;  %v2673_v25 = vpack.c.bf16 %v2204_v6, %v2202_v13  ;;  %v2165_v47 = vadd.f32 %v2164_v23, %v1271_v5  ;;  %v2208_v26 = vadd.f32 %v2207_v24, %v1279_v7 }
 0x42a   :  { %2396 = vst [vmem:[%s3295_s11 + $0x20] sm:$0xff] %v2672_v9  ;;  %2397 = vst [vmem:[%s3295_s11 + $0x28] sm:$0xff] %v2673_v25  ;;  %v2680_v44 = vpack.c.bf16 %v2165_v47, %v2163_v21  ;;  %v2681_v11 = vpack.c.bf16 %v2208_v26, %v2206_v45 }
 0x42c   :  { %2404 = vst [vmem:[%s3295_s11 + $0x60] sm:$0xff] %v2680_v44  ;;  %2405 = vst [vmem:[%s3295_s11 + $0x68] sm:$0xff] %v2681_v11 }
 0x444   :  { %v2244_v28 = vpop.f32.mrb[24].mxu0  ;;  %v2287_v29 = vpop.f32.mrb[24].mxu1 }
 0x445   :  { %v2245_v30 = vadd.f32 %v2244_v28, %v1283_v27  ;;  %v2288_v31 = vadd.f32 %v2287_v29, %v1291_v16  ;;  %v2246_v33 = vpop.f32.mrb[25].mxu0  ;;  %v2289_v34 = vpop.f32.mrb[25].mxu1 }
 0x446   :  { %v2247_v35 = vadd.f32 %v2246_v33, %v1287_v19  ;;  %v2290_v40 = vadd.f32 %v2289_v34, %v1295_v22  ;;  %v2248_v41 = vpop.f32.mrb[26].mxu0  ;;  %v2291_v42 = vpop.f32.mrb[26].mxu1 }
 0x447   :  { %v2249_v32 = vadd.f32 %v2248_v41, %v1283_v27  ;;  %v2292_v43 = vadd.f32 %v2291_v42, %v1291_v16  ;;  %v2250_v46 = vpop.f32.mrb[27].mxu0  ;;  %v2293_v48 = vpop.f32.mrb[27].mxu1 }
 0x448   :  { %v2674_v49 = vpack.c.bf16 %v2247_v35, %v2245_v30  ;;  %v2675_v50 = vpack.c.bf16 %v2290_v40, %v2288_v31  ;;  %v2251_v36 = vadd.f32 %v2250_v46, %v1287_v19  ;;  %v2294_v37 = vadd.f32 %v2293_v48, %v1295_v22 }
 0x44a   :  { %2398 = vst [vmem:[%s3295_s11 + $0x30] sm:$0xff] %v2674_v49  ;;  %2399 = vst [vmem:[%s3295_s11 + $0x38] sm:$0xff] %v2675_v50  ;;  %v2682_v38 = vpack.c.bf16 %v2251_v36, %v2249_v32  ;;  %v2683_v39 = vpack.c.bf16 %v2294_v37, %v2292_v43 }
 0x44c   :  { %2406 = vst [vmem:[%s3295_s11 + $0x70] sm:$0xff] %v2682_v38  ;;  %2407 = vst [vmem:[%s3295_s11 + $0x78] sm:$0xff] %v2683_v39 }
 0x44d   :  { %2416 = vsyncpa [#allocation3], 1 }
 0x44e   :  { %2417 = vsyncpa [#allocation5], 1 }

</bundles_post_ra>
